<compile_context>
chip_gen: v5e
topology: v5e:2x2
jax: 0.10.0
libtpu: 0.0.40
codegen_flags: <defaults>
</compile_context>

<pallas_src>
import math

import jax
import jax.numpy as jnp
from jax.experimental import pallas as pl
from jax.experimental.pallas import tpu as pltpu

HIDDEN = 32
INTERMEDIATE = 64
NUM_HEADS = 4
HEAD_DIM = HIDDEN // NUM_HEADS
LN_EPS = 1e-5            # PyTorch nn.LayerNorm default
MASK_NEG = -1e30         # user-mask additive bias (matches the reference)
STRUCT_NEG = -1e38       # structural / padding mask (dominates MASK_NEG, exp -> exact 0)

# rows of the packed (9, H) vector bundle
(V_G_LN0, V_B_LN0, V_B_AO, V_G_SO, V_B_SO,
 V_B_O, V_G_OUT, V_B_OUT, V_B_D2) = range(9)


def _layernorm(x, gamma, beta):
    mean = jnp.mean(x, axis=-1, keepdims=True)
    var = jnp.mean(jnp.square(x - mean), axis=-1, keepdims=True)
    return (x - mean) * jax.lax.rsqrt(var + LN_EPS) * gamma + beta


def encoder_d2c_kernel(cell_ref, drug_ref, cqb_ref, dqb_ref,
                       wqkv_ref, bqkv_ref, wao_ref,
                       wup_ref, bup_ref, wdn_ref, vec_ref,
                       cell_out_ref, drug_out_ref):
    tb, lc, hid = cell_ref.shape
    _, ld, _ = drug_ref.shape
    lt = lc + ld
    rt = tb * lt

    vecs = vec_ref[...]
    g_ln0 = vecs[V_G_LN0:V_G_LN0 + 1, :]
    b_ln0 = vecs[V_B_LN0:V_B_LN0 + 1, :]
    b_ao = vecs[V_B_AO:V_B_AO + 1, :]
    g_so = vecs[V_G_SO:V_G_SO + 1, :]
    b_so = vecs[V_B_SO:V_B_SO + 1, :]
    b_o = vecs[V_B_O:V_B_O + 1, :]
    g_out = vecs[V_G_OUT:V_G_OUT + 1, :]
    b_out = vecs[V_B_OUT:V_B_OUT + 1, :]
    b_d2 = vecs[V_B_D2:V_B_D2 + 1, :]

    cell = cell_ref[...].astype(jnp.float32)                  # (tb, lc, H)
    drug = drug_ref[...].astype(jnp.float32)                  # (tb, ld, H)

    cell1 = _layernorm(cell, g_ln0, b_ln0)                    # cell_1 = LN0(cell)

    # Per-batch stacking along the sequence axis: [cell positions | drug positions].
    # lc, ld are padded to multiples of 8 wrapper-side -> concat/reshapes are aligned.
    comb = jnp.concatenate([cell1, drug], axis=1)             # (tb, lt, H)
    rows = comb.reshape(rt, hid)                              # row slab; SelfOutput residual

    # One fused Q|K|V matmul for BOTH streams.
    qkv = jnp.dot(rows, wqkv_ref[...],
                  preferred_element_type=jnp.float32) + bqkv_ref[...]   # (rt, 3H)

    def split_heads(base):
        # move heads from the lane domain to a leading batch dim (head-major)
        return jnp.concatenate(
            [qkv[:, base + h * HEAD_DIM:base + (h + 1) * HEAD_DIM].reshape(tb, lt, HEAD_DIM)
             for h in range(NUM_HEADS)], axis=0)              # (NUM_HEADS*tb, lt, HEAD_DIM)

    q = split_heads(0)
    k = split_heads(hid)
    v = split_heads(2 * hid)

    # Combined additive key bias (built once per step):
    #   cell queries (pos <  lc) -> cqb: cell-key block structurally masked, drug keys user-masked
    #   drug queries (pos >= lc) -> dqb: drug-key block structurally masked, cell keys user-masked
    q_is_cell = jax.lax.broadcasted_iota(jnp.int32, (lt, 1), 0) < lc
    bias_b = jnp.where(q_is_cell, cqb_ref[...], dqb_ref[...])            # (tb, lt, lt)
    bias = jnp.concatenate([bias_b] * NUM_HEADS, axis=0)                 # (NUM_HEADS*tb, lt, lt)

    scale = 1.0 / math.sqrt(HEAD_DIM)
    s = jnp.einsum('bqd,bkd->bqk', q, k,
                   preferred_element_type=jnp.float32) * scale + bias
    m = jnp.max(s, axis=-1, keepdims=True)
    p = jnp.exp(s - m)
    denom = jnp.sum(p, axis=-1, keepdims=True)
    # reciprocal + multiply instead of a VALU divide; approx=False keeps 1e-4 parity
    p = p * pl.reciprocal(denom, approx=False)
    ctx = jnp.einsum('bqk,bkd->bqd', p, v,
                     preferred_element_type=jnp.float32)                 # (NUM_HEADS*tb, lt, HD)
    ctx = ctx.reshape(NUM_HEADS, tb, lt, HEAD_DIM)

    # Shared SelfOutput projection folded per head (sublane-aligned w_ao slices).
    wao = wao_ref[...]
    attn = jnp.dot(ctx[0].reshape(rt, HEAD_DIM), wao[:HEAD_DIM, :],
                   preferred_element_type=jnp.float32)
    for h in range(1, NUM_HEADS):
        attn = attn + jnp.dot(ctx[h].reshape(rt, HEAD_DIM),
                              wao[h * HEAD_DIM:(h + 1) * HEAD_DIM, :],
                              preferred_element_type=jnp.float32)

    # Merged shared SelfOutput LayerNorm over both streams.
    ao = _layernorm(attn + b_ao + rows, g_so, b_so)                      # (rt, H)
    ao3 = ao.reshape(tb, lt, hid)
    cell_ao = ao3[:, :lc, :]
    drug_ao = ao3[:, lc:, :]

    # cell branch pre-FFN: cell_2 = cell_1 + cell_ao ; cell_3 = LN0(cell_2)
    cell2 = cell1 + cell_ao
    cell3 = _layernorm(cell2, g_ln0, b_ln0)

    # Lane-dense merged FFN: wup = [w_d1 | w_i] (H, 2I), wdn = blockdiag(w_d2, w_o) (2I, 2H).
    ffn_in = jnp.concatenate([cell3, drug_ao], axis=1).reshape(rt, hid)
    up = jnp.maximum(
        jnp.dot(ffn_in, wup_ref[...], preferred_element_type=jnp.float32) + bup_ref[...],
        0.0)                                                             # (rt, 2I)
    dn = jnp.dot(up, wdn_ref[...], preferred_element_type=jnp.float32)   # (rt, 2H)
    dn3 = dn.reshape(tb, lt, 2 * hid)

    # cell: cell_out = cell_2 + dense(cell_3)   (dense output = lanes [0, H) of cell rows)
    cell_out = cell2 + dn3[:, :lc, :hid] + b_d2
    # drug: Output(Intermediate(drug_ao), drug_ao)  (down output = lanes [H, 2H) of drug rows)
    drug_out = _layernorm(dn3[:, lc:, hid:] + b_o + drug_ao, g_out, b_out)

    cell_out_ref[...] = cell_out.astype(cell_out_ref.dtype)
    drug_out_ref[...] = drug_out.astype(drug_out_ref.dtype)


def _round_up(x, m):
    return ((x + m - 1) // m) * m


def encoder_d2c_forward(cell, drug, drug_attention_mask=None,
                        cell_attention_mask=None, *, params):
    (g_ln0, b_ln0, wq, bq, wk, bk, wv, bv, w_ao, b_ao, g_so, b_so,
     w_i, b_i, w_o, b_o, g_out, b_out, w_d1, b_d1, w_d2, b_d2) = params
    B, LC, H = cell.shape
    _, LD, _ = drug.shape
    assert H == HIDDEN

    LCp = _round_up(LC, 8)
    LDp = _round_up(LD, 8)
    LT = LCp + LDp

    # ---- tile heuristic: tall row slabs, bounded score tensors, >=2 grid steps (v7x) ----
    tb = max(1, min(B,
                    max(1, 2048 // LT),                                   # ~2K rows / step
                    max(1, (3 * 1024 * 1024) // (4 * NUM_HEADS * LT * LT))))  # score budget
    if B >= 2:
        tb = min(tb, (B + 1) // 2)   # keep both v7x TensorCores busy
    tb = max(tb, 1)
    Bp = _round_up(B, tb)

    # ---- pad activations (batch + sequence) instead of shrinking tb ----
    cell_p = jnp.pad(cell, ((0, Bp - B), (0, LCp - LC), (0, 0)))
    drug_p = jnp.pad(drug, ((0, Bp - B), (0, LDp - LD), (0, 0)))

    # ---- key-bias vectors over the combined [cell | drug] key axis ----
    def user_bias(mask, lk):
        if mask is None:
            return jnp.zeros((B, lk), jnp.float32)
        mask = jnp.asarray(mask).reshape(B, lk)      # accepts (B, lk) or (B, 1, lk)
        return jnp.where(mask == 0, 0.0, MASK_NEG).astype(jnp.float32)

    cqb = jnp.full((Bp, LT), STRUCT_NEG, jnp.float32)       # bias for cell queries
    cqb = cqb.at[:B, LCp:LCp + LD].set(user_bias(cell_attention_mask, LD))
    dqb = jnp.full((Bp, LT), STRUCT_NEG, jnp.float32)       # bias for drug queries
    dqb = dqb.at[:B, :LC].set(user_bias(drug_attention_mask, LC))
    cqb = cqb[:, None, :]
    dqb = dqb[:, None, :]

    # ---- wrapper-side packing: fused QKV, lane-dense merged FFN, one vector bundle ----
    wqkv = jnp.concatenate([wq, wk, wv], axis=1)             # (H, 3H)
    bqkv = jnp.concatenate([bq, bk, bv], axis=0)[None, :]    # (1, 3H)
    wup = jnp.concatenate([w_d1, w_i], axis=1)               # (H, 2I): cell-dense | drug-inter
    bup = jnp.concatenate([b_d1, b_i], axis=0)[None, :]      # (1, 2I)
    wdn = jnp.zeros((2 * INTERMEDIATE, 2 * HIDDEN), jnp.float32)
    wdn = wdn.at[:INTERMEDIATE, :HIDDEN].set(w_d2)           # cell down-proj -> lanes [0, H)
    wdn = wdn.at[INTERMEDIATE:, HIDDEN:].set(w_o)            # drug down-proj -> lanes [H, 2H)
    vecs = jnp.stack([g_ln0, b_ln0, b_ao, g_so, b_so,
                      b_o, g_out, b_out, b_d2])               # (9, H)

    def act_spec(l):
        return pl.BlockSpec((tb, l, H), lambda b: (b, 0, 0))

    def bias_spec():
        return pl.BlockSpec((tb, 1, LT), lambda b: (b, 0, 0))

    def w_spec(shape):
        n = len(shape)
        return pl.BlockSpec(shape, lambda b, _n=n: (0,) * _n)

    cell_out, drug_out = pl.pallas_call(
        encoder_d2c_kernel,
        out_shape=(jax.ShapeDtypeStruct((Bp, LCp, H), cell.dtype),
                   jax.ShapeDtypeStruct((Bp, LDp, H), drug.dtype)),
        grid=(Bp // tb,),
        in_specs=[act_spec(LCp), act_spec(LDp), bias_spec(), bias_spec(),
                  w_spec(wqkv.shape), w_spec(bqkv.shape), w_spec(w_ao.shape),
                  w_spec(wup.shape), w_spec(bup.shape), w_spec(wdn.shape),
                  w_spec(vecs.shape)],
        out_specs=(act_spec(LCp), act_spec(LDp)),
        compiler_params=pltpu.CompilerParams(
            dimension_semantics=("parallel",),
            vmem_limit_bytes=32 * 1024 * 1024),
    )(cell_p, drug_p, cqb, dqb, wqkv, bqkv, w_ao, wup, bup, wdn, vecs)

    return cell_out[:B, :LC], drug_out[:B, :LD]


# ---------------- pure-JAX reference (for correctness check) ----------------
def encoder_d2c_ref(cell, drug, drug_attention_mask, cell_attention_mask, params):
    (g_ln0, b_ln0, wq, bq, wk, bk, wv, bv, w_ao, b_ao, g_so, b_so,
     w_i, b_i, w_o, b_o, g_out, b_out, w_d1, b_d1, w_d2, b_d2) = params

    def ln(x, g, b):
        m = jnp.mean(x, -1, keepdims=True)
        v = jnp.mean(jnp.square(x - m), -1, keepdims=True)
        return (x - m) * jax.lax.rsqrt(v + LN_EPS) * g + b

    def heads(x):
        b, l, _ = x.shape
        return x.reshape(b, l, NUM_HEADS, HEAD_DIM).transpose(0, 2, 1, 3)

    def cross_attn(xq, xkv, mask):
        q = heads(xq @ wq + bq)
        k = heads(xkv @ wk + bk)
        v = heads(xkv @ wv + bv)
        s = jnp.einsum('bhqd,bhkd->bhqk', q, k) / math.sqrt(HEAD_DIM)
        if mask is not None:
            s = s + jnp.where(mask == 0, 0.0, MASK_NEG)[:, None, None, :]
        p = jax.nn.softmax(s, axis=-1)
        ctx = jnp.einsum('bhqk,bhkd->bhqd', p, v)
        return ctx.transpose(0, 2, 1, 3).reshape(xq.shape)

    cell_1 = ln(cell, g_ln0, b_ln0)
    cell_ctx = cross_attn(cell_1, drug, cell_attention_mask)
    drug_ctx = cross_attn(drug, cell_1, drug_attention_mask)
    cell_ao = ln(cell_ctx @ w_ao + b_ao + cell_1, g_so, b_so)
    drug_ao = ln(drug_ctx @ w_ao + b_ao + drug, g_so, b_so)

    cell_2 = cell_1 + cell_ao
    cell_3 = ln(cell_2, g_ln0, b_ln0)
    cell_4 = jnp.maximum(cell_3 @ w_d1 + b_d1, 0.0) @ w_d2 + b_d2
    cell_layer_output = cell_2 + cell_4

    inter = jnp.maximum(drug_ao @ w_i + b_i, 0.0)
    drug_layer_output = ln(inter @ w_o + b_o + drug_ao, g_out, b_out)
    return cell_layer_output, drug_layer_output


def make_params(key):
    ks = jax.random.split(key, 16)

    def lin(kw, kb, din, dout):
        w = jax.random.normal(kw, (din, dout), jnp.float32) / jnp.sqrt(float(din))
        b = 0.02 * jax.random.normal(kb, (dout,), jnp.float32)
        return w, b

    wq, bq = lin(ks[0], ks[1], HIDDEN, HIDDEN)
    wk, bk = lin(ks[2], ks[3], HIDDEN, HIDDEN)
    wv, bv = lin(ks[4], ks[5], HIDDEN, HIDDEN)
    w_ao, b_ao = lin(ks[6], ks[7], HIDDEN, HIDDEN)
    w_i, b_i = lin(ks[8], ks[9], HIDDEN, INTERMEDIATE)
    w_o, b_o = lin(ks[10], ks[11], INTERMEDIATE, HIDDEN)
    w_d1, b_d1 = lin(ks[12], ks[13], HIDDEN, INTERMEDIATE)
    w_d2, b_d2 = lin(ks[14], ks[15], INTERMEDIATE, HIDDEN)

    def ln_params(i):
        g = 1.0 + 0.1 * jax.random.normal(jax.random.fold_in(key, 100 + i),
                                          (HIDDEN,), jnp.float32)
        b = 0.05 * jax.random.normal(jax.random.fold_in(key, 200 + i),
                                     (HIDDEN,), jnp.float32)
        return g, b

    g_ln0, b_ln0 = ln_params(0)
    g_so, b_so = ln_params(1)
    g_out, b_out = ln_params(2)

    return (g_ln0, b_ln0, wq, bq, wk, bk, wv, bv, w_ao, b_ao, g_so, b_so,
            w_i, b_i, w_o, b_o, g_out, b_out, w_d1, b_d1, w_d2, b_d2)


if __name__ == "__main__":
    key = jax.random.PRNGKey(0)
    params = make_params(jax.random.fold_in(key, 99))

    # ---- case 1: aligned shapes, drug-side mask only (cell mask None = module default) ----
    B, LC, LD = 2, 8, 8
    kc, kd = jax.random.split(jax.random.fold_in(key, 1), 2)
    cell = jax.random.normal(kc, (B, LC, HIDDEN), jnp.float32)
    drug = jax.random.normal(kd, (B, LD, HIDDEN), jnp.float32)
    drug_mask = jnp.zeros((B, LC), jnp.int32).at[:, -2:].set(1)   # mask last 2 cell keys

    cell_out, drug_out = encoder_d2c_forward(cell, drug, drug_mask, None, params=params)
    cell_out, drug_out = jax.block_until_ready((cell_out, drug_out))
    with jax.default_matmul_precision("highest"):
        cell_ref_o, drug_ref_o = encoder_d2c_ref(cell, drug, drug_mask, None, params)
    assert cell_out.shape == (B, LC, HIDDEN) and drug_out.shape == (B, LD, HIDDEN)
    assert jnp.allclose(cell_out, cell_ref_o, atol=1e-4, rtol=1e-4), "case1 cell mismatch"
    assert jnp.allclose(drug_out, drug_ref_o, atol=1e-4, rtol=1e-4), "case1 drug mismatch"

    # ---- case 2: awkward B/LC/LD (exercises batch + sequence padding), both masks,
    #      drug mask supplied as (B, 1, L) to exercise the wrapper's shape guard ----
    B, LC, LD = 3, 5, 7
    kc, kd = jax.random.split(jax.random.fold_in(key, 2), 2)
    cell = jax.random.normal(kc, (B, LC, HIDDEN), jnp.float32)
    drug = jax.random.normal(kd, (B, LD, HIDDEN), jnp.float32)
    drug_mask = jnp.zeros((B, LC), jnp.int32).at[:, -1:].set(1)
    cell_mask = jnp.zeros((B, LD), jnp.int32).at[:, -2:].set(1)

    cell_out, drug_out = encoder_d2c_forward(
        cell, drug, drug_mask[:, None, :], cell_mask, params=params)
    cell_out, drug_out = jax.block_until_ready((cell_out, drug_out))
    with jax.default_matmul_precision("highest"):
        cell_ref_o, drug_ref_o = encoder_d2c_ref(cell, drug, drug_mask, cell_mask, params)
    assert cell_out.shape == (B, LC, HIDDEN) and drug_out.shape == (B, LD, HIDDEN)
    assert jnp.allclose(cell_out, cell_ref_o, atol=1e-4, rtol=1e-4), "case2 cell mismatch"
    assert jnp.allclose(drug_out, drug_ref_o, atol=1e-4, rtol=1e-4), "case2 drug mismatch"

    print("KERNEL_OK")
</pallas_src>

<mosaic_0001>
module attributes {stable_mosaic.version = 11 : i64} {
  func.func @encoder_d2c_kernel(%arg0: i32, %arg1: memref<1x8x32xf32, #tpu.memory_space<vmem>>, %arg2: memref<1x8x32xf32, #tpu.memory_space<vmem>>, %arg3: memref<1x1x16xf32, #tpu.memory_space<vmem>>, %arg4: memref<1x1x16xf32, #tpu.memory_space<vmem>>, %arg5: memref<32x96xf32, #tpu.memory_space<vmem>>, %arg6: memref<1x96xf32, #tpu.memory_space<vmem>>, %arg7: memref<32x32xf32, #tpu.memory_space<vmem>>, %arg8: memref<32x128xf32, #tpu.memory_space<vmem>>, %arg9: memref<1x128xf32, #tpu.memory_space<vmem>>, %arg10: memref<128x64xf32, #tpu.memory_space<vmem>>, %arg11: memref<9x32xf32, #tpu.memory_space<vmem>>, %arg12: memref<1x8x32xf32, #tpu.memory_space<vmem>>, %arg13: memref<1x8x32xf32, #tpu.memory_space<vmem>>) attributes {dimension_semantics = [#tpu.dimension_semantics<parallel>], iteration_bounds = array<i64: 2>, scalar_prefetch = 0 : i64, scratch_operands = 0 : i64, tpu.core_type = #tpu.core_type<tc>, window_params = [{transform_indices = @transform_0, window_bounds = array<i64: 1, 8, 32>}, {transform_indices = @transform_1, window_bounds = array<i64: 1, 8, 32>}, {transform_indices = @transform_2, window_bounds = array<i64: 1, 1, 16>}, {transform_indices = @transform_3, window_bounds = array<i64: 1, 1, 16>}, {pipeline_mode = #tpu.pipeline_mode<synchronous>, transform_indices = @transform_4, window_bounds = array<i64: 32, 96>}, {pipeline_mode = #tpu.pipeline_mode<synchronous>, transform_indices = @transform_5, window_bounds = array<i64: 1, 96>}, {pipeline_mode = #tpu.pipeline_mode<synchronous>, transform_indices = @transform_6, window_bounds = array<i64: 32, 32>}, {pipeline_mode = #tpu.pipeline_mode<synchronous>, transform_indices = @transform_7, window_bounds = array<i64: 32, 128>}, {pipeline_mode = #tpu.pipeline_mode<synchronous>, transform_indices = @transform_8, window_bounds = array<i64: 1, 128>}, {pipeline_mode = #tpu.pipeline_mode<synchronous>, transform_indices = @transform_9, window_bounds = array<i64: 128, 64>}, {pipeline_mode = #tpu.pipeline_mode<synchronous>, transform_indices = @transform_10, window_bounds = array<i64: 9, 32>}, {transform_indices = @transform_11, window_bounds = array<i64: 1, 8, 32>}, {transform_indices = @transform_12, window_bounds = array<i64: 1, 8, 32>}]} {
    %c0 = arith.constant 0 : index
    %c0_0 = arith.constant 0 : index
    %0 = vector.load %arg11[%c0, %c0_0] : memref<9x32xf32, #tpu.memory_space<vmem>>, vector<9x32xf32>
    %1 = vector.extract_strided_slice %0 {offsets = [0, 0], sizes = [1, 32], strides = [1, 1]} : vector<9x32xf32> to vector<1x32xf32>
    %2 = vector.extract_strided_slice %0 {offsets = [1, 0], sizes = [1, 32], strides = [1, 1]} : vector<9x32xf32> to vector<1x32xf32>
    %3 = vector.extract_strided_slice %0 {offsets = [2, 0], sizes = [1, 32], strides = [1, 1]} : vector<9x32xf32> to vector<1x32xf32>
    %4 = vector.extract_strided_slice %0 {offsets = [3, 0], sizes = [1, 32], strides = [1, 1]} : vector<9x32xf32> to vector<1x32xf32>
    %5 = vector.extract_strided_slice %0 {offsets = [4, 0], sizes = [1, 32], strides = [1, 1]} : vector<9x32xf32> to vector<1x32xf32>
    %6 = vector.extract_strided_slice %0 {offsets = [5, 0], sizes = [1, 32], strides = [1, 1]} : vector<9x32xf32> to vector<1x32xf32>
    %7 = vector.extract_strided_slice %0 {offsets = [6, 0], sizes = [1, 32], strides = [1, 1]} : vector<9x32xf32> to vector<1x32xf32>
    %8 = vector.extract_strided_slice %0 {offsets = [7, 0], sizes = [1, 32], strides = [1, 1]} : vector<9x32xf32> to vector<1x32xf32>
    %9 = vector.extract_strided_slice %0 {offsets = [8, 0], sizes = [1, 32], strides = [1, 1]} : vector<9x32xf32> to vector<1x32xf32>
    %c0_1 = arith.constant 0 : index
    %c0_2 = arith.constant 0 : index
    %c0_3 = arith.constant 0 : index
    %10 = vector.load %arg1[%c0_1, %c0_2, %c0_3] : memref<1x8x32xf32, #tpu.memory_space<vmem>>, vector<1x8x32xf32>
    %c0_4 = arith.constant 0 : index
    %c0_5 = arith.constant 0 : index
    %c0_6 = arith.constant 0 : index
    %11 = vector.load %arg2[%c0_4, %c0_5, %c0_6] : memref<1x8x32xf32, #tpu.memory_space<vmem>>, vector<1x8x32xf32>
    %cst = arith.constant dense<0.000000e+00> : vector<1x8xf32>
    %12 = vector.multi_reduction <add>, %10, %cst [2] : vector<1x8x32xf32> to vector<1x8xf32>
    %13 = vector.shape_cast %12 : vector<1x8xf32> to vector<1x8x1xf32>
    %cst_7 = arith.constant 3.200000e+01 : f32
    %14 = vector.broadcast %cst_7 : f32 to vector<1x8x1xf32>
    %15 = arith.divf %13, %14 : vector<1x8x1xf32>
    %16 = vector.broadcast %15 : vector<1x8x1xf32> to vector<1x8x32xf32>
    %17 = arith.subf %10, %16 : vector<1x8x32xf32>
    %18 = arith.mulf %17, %17 : vector<1x8x32xf32>
    %cst_8 = arith.constant dense<0.000000e+00> : vector<1x8xf32>
    %19 = vector.multi_reduction <add>, %18, %cst_8 [2] : vector<1x8x32xf32> to vector<1x8xf32>
    %20 = vector.shape_cast %19 : vector<1x8xf32> to vector<1x8x1xf32>
    %cst_9 = arith.constant 3.200000e+01 : f32
    %21 = vector.broadcast %cst_9 : f32 to vector<1x8x1xf32>
    %22 = arith.divf %20, %21 : vector<1x8x1xf32>
    %23 = vector.broadcast %15 : vector<1x8x1xf32> to vector<1x8x32xf32>
    %24 = arith.subf %10, %23 : vector<1x8x32xf32>
    %cst_10 = arith.constant 9.99999974E-6 : f32
    %25 = vector.broadcast %cst_10 : f32 to vector<1x8x1xf32>
    %26 = arith.addf %22, %25 : vector<1x8x1xf32>
    %27 = math.rsqrt %26 : vector<1x8x1xf32>
    %28 = vector.broadcast %27 : vector<1x8x1xf32> to vector<1x8x32xf32>
    %29 = arith.mulf %24, %28 : vector<1x8x32xf32>
    %30 = vector.shape_cast %1 : vector<1x32xf32> to vector<1x1x32xf32>
    %31 = vector.broadcast %30 : vector<1x1x32xf32> to vector<1x8x32xf32>
    %32 = arith.mulf %29, %31 : vector<1x8x32xf32>
    %33 = vector.shape_cast %2 : vector<1x32xf32> to vector<1x1x32xf32>
    %34 = vector.broadcast %33 : vector<1x1x32xf32> to vector<1x8x32xf32>
    %35 = arith.addf %32, %34 : vector<1x8x32xf32>
    %36 = tpu.concatenate %35, %11 in 1 : vector<1x8x32xf32>, vector<1x8x32xf32> -> vector<1x16x32xf32>
    %37 = vector.shape_cast %36 : vector<1x16x32xf32> to vector<16x32xf32>
    %c0_11 = arith.constant 0 : index
    %c0_12 = arith.constant 0 : index
    %38 = vector.load %arg5[%c0_11, %c0_12] : memref<32x96xf32, #tpu.memory_space<vmem>>, vector<32x96xf32>
    %cst_13 = arith.constant dense<0.000000e+00> : vector<16x96xf32>
    %39 = tpu.matmul %37, %38, %cst_13 {dimension_numbers = #tpu.dot_dimension_numbers<[1], [0], [0], [1], [0, 0, 1, 1], [], []>} : vector<16x32xf32>, vector<32x96xf32>, vector<16x96xf32> -> vector<16x96xf32>
    %c0_14 = arith.constant 0 : index
    %c0_15 = arith.constant 0 : index
    %40 = vector.load %arg6[%c0_14, %c0_15] : memref<1x96xf32, #tpu.memory_space<vmem>>, vector<1x96xf32>
    %41 = vector.broadcast %40 : vector<1x96xf32> to vector<16x96xf32>
    %42 = arith.addf %39, %41 : vector<16x96xf32>
    %43 = vector.extract_strided_slice %42 {offsets = [0, 0], sizes = [16, 8], strides = [1, 1]} : vector<16x96xf32> to vector<16x8xf32>
    %44 = vector.shape_cast %43 : vector<16x8xf32> to vector<1x16x8xf32>
    %45 = vector.extract_strided_slice %42 {offsets = [0, 8], sizes = [16, 8], strides = [1, 1]} : vector<16x96xf32> to vector<16x8xf32>
    %46 = vector.shape_cast %45 : vector<16x8xf32> to vector<1x16x8xf32>
    %47 = vector.extract_strided_slice %42 {offsets = [0, 16], sizes = [16, 8], strides = [1, 1]} : vector<16x96xf32> to vector<16x8xf32>
    %48 = vector.shape_cast %47 : vector<16x8xf32> to vector<1x16x8xf32>
    %49 = vector.extract_strided_slice %42 {offsets = [0, 24], sizes = [16, 8], strides = [1, 1]} : vector<16x96xf32> to vector<16x8xf32>
    %50 = vector.shape_cast %49 : vector<16x8xf32> to vector<1x16x8xf32>
    %51 = tpu.concatenate %44, %46, %48, %50 in 0 : vector<1x16x8xf32>, vector<1x16x8xf32>, vector<1x16x8xf32>, vector<1x16x8xf32> -> vector<4x16x8xf32>
    %52 = vector.extract_strided_slice %42 {offsets = [0, 32], sizes = [16, 8], strides = [1, 1]} : vector<16x96xf32> to vector<16x8xf32>
    %53 = vector.shape_cast %52 : vector<16x8xf32> to vector<1x16x8xf32>
    %54 = vector.extract_strided_slice %42 {offsets = [0, 40], sizes = [16, 8], strides = [1, 1]} : vector<16x96xf32> to vector<16x8xf32>
    %55 = vector.shape_cast %54 : vector<16x8xf32> to vector<1x16x8xf32>
    %56 = vector.extract_strided_slice %42 {offsets = [0, 48], sizes = [16, 8], strides = [1, 1]} : vector<16x96xf32> to vector<16x8xf32>
    %57 = vector.shape_cast %56 : vector<16x8xf32> to vector<1x16x8xf32>
    %58 = vector.extract_strided_slice %42 {offsets = [0, 56], sizes = [16, 8], strides = [1, 1]} : vector<16x96xf32> to vector<16x8xf32>
    %59 = vector.shape_cast %58 : vector<16x8xf32> to vector<1x16x8xf32>
    %60 = tpu.concatenate %53, %55, %57, %59 in 0 : vector<1x16x8xf32>, vector<1x16x8xf32>, vector<1x16x8xf32>, vector<1x16x8xf32> -> vector<4x16x8xf32>
    %61 = vector.extract_strided_slice %42 {offsets = [0, 64], sizes = [16, 8], strides = [1, 1]} : vector<16x96xf32> to vector<16x8xf32>
    %62 = vector.shape_cast %61 : vector<16x8xf32> to vector<1x16x8xf32>
    %63 = vector.extract_strided_slice %42 {offsets = [0, 72], sizes = [16, 8], strides = [1, 1]} : vector<16x96xf32> to vector<16x8xf32>
    %64 = vector.shape_cast %63 : vector<16x8xf32> to vector<1x16x8xf32>
    %65 = vector.extract_strided_slice %42 {offsets = [0, 80], sizes = [16, 8], strides = [1, 1]} : vector<16x96xf32> to vector<16x8xf32>
    %66 = vector.shape_cast %65 : vector<16x8xf32> to vector<1x16x8xf32>
    %67 = vector.extract_strided_slice %42 {offsets = [0, 88], sizes = [16, 8], strides = [1, 1]} : vector<16x96xf32> to vector<16x8xf32>
    %68 = vector.shape_cast %67 : vector<16x8xf32> to vector<1x16x8xf32>
    %69 = tpu.concatenate %62, %64, %66, %68 in 0 : vector<1x16x8xf32>, vector<1x16x8xf32>, vector<1x16x8xf32>, vector<1x16x8xf32> -> vector<4x16x8xf32>
    %70 = tpu.iota {dimensions = array<i32: 0>} : vector<16x1xi32>
    %c8_i32 = arith.constant 8 : i32
    %71 = vector.broadcast %c8_i32 : i32 to vector<16x1xi32>
    %72 = arith.cmpi slt, %70, %71 : vector<16x1xi32>
    %c0_16 = arith.constant 0 : index
    %c0_17 = arith.constant 0 : index
    %c0_18 = arith.constant 0 : index
    %73 = vector.load %arg3[%c0_16, %c0_17, %c0_18] : memref<1x1x16xf32, #tpu.memory_space<vmem>>, vector<1x1x16xf32>
    %c0_19 = arith.constant 0 : index
    %c0_20 = arith.constant 0 : index
    %c0_21 = arith.constant 0 : index
    %74 = vector.load %arg4[%c0_19, %c0_20, %c0_21] : memref<1x1x16xf32, #tpu.memory_space<vmem>>, vector<1x1x16xf32>
    %75 = vector.shape_cast %72 : vector<16x1xi1> to vector<1x16x1xi1>
    %76 = vector.broadcast %75 : vector<1x16x1xi1> to vector<1x16x16xi1>
    %77 = vector.shape_cast %73 : vector<1x1x16xf32> to vector<1x1x16xf32>
    %78 = vector.broadcast %77 : vector<1x1x16xf32> to vector<1x16x16xf32>
    %79 = vector.shape_cast %74 : vector<1x1x16xf32> to vector<1x1x16xf32>
    %80 = vector.broadcast %79 : vector<1x1x16xf32> to vector<1x16x16xf32>
    %81 = arith.select %76, %78, %80 : vector<1x16x16xi1>, vector<1x16x16xf32>
    %82 = tpu.concatenate %81, %81, %81, %81 in 0 : vector<1x16x16xf32>, vector<1x16x16xf32>, vector<1x16x16xf32>, vector<1x16x16xf32> -> vector<4x16x16xf32>
    "tpu.trace_start"() <{level = 10 : i32, message = "bqd,bkd->bqk"}> : () -> ()
    %cst_22 = arith.constant dense<0.000000e+00> : vector<4x16x16xf32>
    %83 = tpu.matmul %51, %60, %cst_22 {dimension_numbers = #tpu.dot_dimension_numbers<[2], [2], [1], [1], [0, 0, 0, 1, 1, 1], [0], [0]>} : vector<4x16x8xf32>, vector<4x16x8xf32>, vector<4x16x16xf32> -> vector<4x16x16xf32>
    "tpu.trace_stop"() : () -> ()
    %cst_23 = arith.constant 0.353553385 : f32
    %84 = vector.broadcast %cst_23 : f32 to vector<4x16x16xf32>
    %85 = arith.mulf %83, %84 : vector<4x16x16xf32>
    %86 = arith.addf %85, %82 : vector<4x16x16xf32>
    %cst_24 = arith.constant dense<0xFF800000> : vector<4x16xf32>
    %87 = vector.multi_reduction <maximumf>, %86, %cst_24 [2] : vector<4x16x16xf32> to vector<4x16xf32>
    %88 = vector.shape_cast %87 : vector<4x16xf32> to vector<4x16x1xf32>
    %89 = vector.broadcast %88 : vector<4x16x1xf32> to vector<4x16x16xf32>
    %90 = arith.subf %86, %89 : vector<4x16x16xf32>
    %91 = math.exp %90 : vector<4x16x16xf32>
    %cst_25 = arith.constant dense<0.000000e+00> : vector<4x16xf32>
    %92 = vector.multi_reduction <add>, %91, %cst_25 [2] : vector<4x16x16xf32> to vector<4x16xf32>
    %93 = vector.shape_cast %92 : vector<4x16xf32> to vector<4x16x1xf32>
    %94 = tpu.reciprocal %93 : vector<4x16x1xf32> -> vector<4x16x1xf32>
    %95 = vector.broadcast %94 : vector<4x16x1xf32> to vector<4x16x16xf32>
    %96 = arith.mulf %91, %95 : vector<4x16x16xf32>
    "tpu.trace_start"() <{level = 10 : i32, message = "bqk,bkd->bqd"}> : () -> ()
    %cst_26 = arith.constant dense<0.000000e+00> : vector<4x16x8xf32>
    %97 = tpu.matmul %96, %69, %cst_26 {dimension_numbers = #tpu.dot_dimension_numbers<[2], [1], [1], [2], [0, 0, 0, 1, 1, 2], [0], [0]>} : vector<4x16x16xf32>, vector<4x16x8xf32>, vector<4x16x8xf32> -> vector<4x16x8xf32>
    "tpu.trace_stop"() : () -> ()
    %98 = vector.shape_cast %97 : vector<4x16x8xf32> to vector<4x1x16x8xf32>
    %c0_27 = arith.constant 0 : index
    %c0_28 = arith.constant 0 : index
    %99 = vector.load %arg7[%c0_27, %c0_28] : memref<32x32xf32, #tpu.memory_space<vmem>>, vector<32x32xf32>
    %100 = vector.extract_strided_slice %98 {offsets = [0, 0, 0, 0], sizes = [1, 1, 16, 8], strides = [1, 1, 1, 1]} : vector<4x1x16x8xf32> to vector<1x1x16x8xf32>
    %101 = vector.shape_cast %100 : vector<1x1x16x8xf32> to vector<1x16x8xf32>
    %102 = vector.shape_cast %101 : vector<1x16x8xf32> to vector<16x8xf32>
    %103 = vector.extract_strided_slice %99 {offsets = [0, 0], sizes = [8, 32], strides = [1, 1]} : vector<32x32xf32> to vector<8x32xf32>
    %cst_29 = arith.constant dense<0.000000e+00> : vector<16x32xf32>
    %104 = tpu.matmul %102, %103, %cst_29 {dimension_numbers = #tpu.dot_dimension_numbers<[1], [0], [0], [1], [0, 0, 1, 1], [], []>} : vector<16x8xf32>, vector<8x32xf32>, vector<16x32xf32> -> vector<16x32xf32>
    %105 = vector.extract_strided_slice %98 {offsets = [1, 0, 0, 0], sizes = [1, 1, 16, 8], strides = [1, 1, 1, 1]} : vector<4x1x16x8xf32> to vector<1x1x16x8xf32>
    %106 = vector.shape_cast %105 : vector<1x1x16x8xf32> to vector<1x16x8xf32>
    %107 = vector.shape_cast %106 : vector<1x16x8xf32> to vector<16x8xf32>
    %108 = vector.extract_strided_slice %99 {offsets = [8, 0], sizes = [8, 32], strides = [1, 1]} : vector<32x32xf32> to vector<8x32xf32>
    %cst_30 = arith.constant dense<0.000000e+00> : vector<16x32xf32>
    %109 = tpu.matmul %107, %108, %cst_30 {dimension_numbers = #tpu.dot_dimension_numbers<[1], [0], [0], [1], [0, 0, 1, 1], [], []>} : vector<16x8xf32>, vector<8x32xf32>, vector<16x32xf32> -> vector<16x32xf32>
    %110 = arith.addf %104, %109 : vector<16x32xf32>
    %111 = vector.extract_strided_slice %98 {offsets = [2, 0, 0, 0], sizes = [1, 1, 16, 8], strides = [1, 1, 1, 1]} : vector<4x1x16x8xf32> to vector<1x1x16x8xf32>
    %112 = vector.shape_cast %111 : vector<1x1x16x8xf32> to vector<1x16x8xf32>
    %113 = vector.shape_cast %112 : vector<1x16x8xf32> to vector<16x8xf32>
    %114 = vector.extract_strided_slice %99 {offsets = [16, 0], sizes = [8, 32], strides = [1, 1]} : vector<32x32xf32> to vector<8x32xf32>
    %cst_31 = arith.constant dense<0.000000e+00> : vector<16x32xf32>
    %115 = tpu.matmul %113, %114, %cst_31 {dimension_numbers = #tpu.dot_dimension_numbers<[1], [0], [0], [1], [0, 0, 1, 1], [], []>} : vector<16x8xf32>, vector<8x32xf32>, vector<16x32xf32> -> vector<16x32xf32>
    %116 = arith.addf %110, %115 : vector<16x32xf32>
    %117 = vector.extract_strided_slice %98 {offsets = [3, 0, 0, 0], sizes = [1, 1, 16, 8], strides = [1, 1, 1, 1]} : vector<4x1x16x8xf32> to vector<1x1x16x8xf32>
    %118 = vector.shape_cast %117 : vector<1x1x16x8xf32> to vector<1x16x8xf32>
    %119 = vector.shape_cast %118 : vector<1x16x8xf32> to vector<16x8xf32>
    %120 = vector.extract_strided_slice %99 {offsets = [24, 0], sizes = [8, 32], strides = [1, 1]} : vector<32x32xf32> to vector<8x32xf32>
    %cst_32 = arith.constant dense<0.000000e+00> : vector<16x32xf32>
    %121 = tpu.matmul %119, %120, %cst_32 {dimension_numbers = #tpu.dot_dimension_numbers<[1], [0], [0], [1], [0, 0, 1, 1], [], []>} : vector<16x8xf32>, vector<8x32xf32>, vector<16x32xf32> -> vector<16x32xf32>
    %122 = arith.addf %116, %121 : vector<16x32xf32>
    %123 = vector.broadcast %3 : vector<1x32xf32> to vector<16x32xf32>
    %124 = arith.addf %122, %123 : vector<16x32xf32>
    %125 = arith.addf %124, %37 : vector<16x32xf32>
    %cst_33 = arith.constant dense<0.000000e+00> : vector<16xf32>
    %126 = vector.multi_reduction <add>, %125, %cst_33 [1] : vector<16x32xf32> to vector<16xf32>
    %127 = vector.shape_cast %126 : vector<16xf32> to vector<16x1xf32>
    %cst_34 = arith.constant 3.200000e+01 : f32
    %128 = vector.broadcast %cst_34 : f32 to vector<16x1xf32>
    %129 = arith.divf %127, %128 : vector<16x1xf32>
    %130 = vector.broadcast %129 : vector<16x1xf32> to vector<16x32xf32>
    %131 = arith.subf %125, %130 : vector<16x32xf32>
    %132 = arith.mulf %131, %131 : vector<16x32xf32>
    %cst_35 = arith.constant dense<0.000000e+00> : vector<16xf32>
    %133 = vector.multi_reduction <add>, %132, %cst_35 [1] : vector<16x32xf32> to vector<16xf32>
    %134 = vector.shape_cast %133 : vector<16xf32> to vector<16x1xf32>
    %cst_36 = arith.constant 3.200000e+01 : f32
    %135 = vector.broadcast %cst_36 : f32 to vector<16x1xf32>
    %136 = arith.divf %134, %135 : vector<16x1xf32>
    %137 = vector.broadcast %129 : vector<16x1xf32> to vector<16x32xf32>
    %138 = arith.subf %125, %137 : vector<16x32xf32>
    %cst_37 = arith.constant 9.99999974E-6 : f32
    %139 = vector.broadcast %cst_37 : f32 to vector<16x1xf32>
    %140 = arith.addf %136, %139 : vector<16x1xf32>
    %141 = math.rsqrt %140 : vector<16x1xf32>
    %142 = vector.broadcast %141 : vector<16x1xf32> to vector<16x32xf32>
    %143 = arith.mulf %138, %142 : vector<16x32xf32>
    %144 = vector.broadcast %4 : vector<1x32xf32> to vector<16x32xf32>
    %145 = arith.mulf %143, %144 : vector<16x32xf32>
    %146 = vector.broadcast %5 : vector<1x32xf32> to vector<16x32xf32>
    %147 = arith.addf %145, %146 : vector<16x32xf32>
    %148 = vector.shape_cast %147 : vector<16x32xf32> to vector<1x16x32xf32>
    %149 = vector.extract_strided_slice %148 {offsets = [0, 0, 0], sizes = [1, 8, 32], strides = [1, 1, 1]} : vector<1x16x32xf32> to vector<1x8x32xf32>
    %150 = vector.extract_strided_slice %148 {offsets = [0, 8, 0], sizes = [1, 8, 32], strides = [1, 1, 1]} : vector<1x16x32xf32> to vector<1x8x32xf32>
    %151 = arith.addf %35, %149 : vector<1x8x32xf32>
    %cst_38 = arith.constant dense<0.000000e+00> : vector<1x8xf32>
    %152 = vector.multi_reduction <add>, %151, %cst_38 [2] : vector<1x8x32xf32> to vector<1x8xf32>
    %153 = vector.shape_cast %152 : vector<1x8xf32> to vector<1x8x1xf32>
    %cst_39 = arith.constant 3.200000e+01 : f32
    %154 = vector.broadcast %cst_39 : f32 to vector<1x8x1xf32>
    %155 = arith.divf %153, %154 : vector<1x8x1xf32>
    %156 = vector.broadcast %155 : vector<1x8x1xf32> to vector<1x8x32xf32>
    %157 = arith.subf %151, %156 : vector<1x8x32xf32>
    %158 = arith.mulf %157, %157 : vector<1x8x32xf32>
    %cst_40 = arith.constant dense<0.000000e+00> : vector<1x8xf32>
    %159 = vector.multi_reduction <add>, %158, %cst_40 [2] : vector<1x8x32xf32> to vector<1x8xf32>
    %160 = vector.shape_cast %159 : vector<1x8xf32> to vector<1x8x1xf32>
    %cst_41 = arith.constant 3.200000e+01 : f32
    %161 = vector.broadcast %cst_41 : f32 to vector<1x8x1xf32>
    %162 = arith.divf %160, %161 : vector<1x8x1xf32>
    %163 = vector.broadcast %155 : vector<1x8x1xf32> to vector<1x8x32xf32>
    %164 = arith.subf %151, %163 : vector<1x8x32xf32>
    %cst_42 = arith.constant 9.99999974E-6 : f32
    %165 = vector.broadcast %cst_42 : f32 to vector<1x8x1xf32>
    %166 = arith.addf %162, %165 : vector<1x8x1xf32>
    %167 = math.rsqrt %166 : vector<1x8x1xf32>
    %168 = vector.broadcast %167 : vector<1x8x1xf32> to vector<1x8x32xf32>
    %169 = arith.mulf %164, %168 : vector<1x8x32xf32>
    %170 = vector.shape_cast %1 : vector<1x32xf32> to vector<1x1x32xf32>
    %171 = vector.broadcast %170 : vector<1x1x32xf32> to vector<1x8x32xf32>
    %172 = arith.mulf %169, %171 : vector<1x8x32xf32>
    %173 = vector.shape_cast %2 : vector<1x32xf32> to vector<1x1x32xf32>
    %174 = vector.broadcast %173 : vector<1x1x32xf32> to vector<1x8x32xf32>
    %175 = arith.addf %172, %174 : vector<1x8x32xf32>
    %176 = tpu.concatenate %175, %150 in 1 : vector<1x8x32xf32>, vector<1x8x32xf32> -> vector<1x16x32xf32>
    %177 = vector.shape_cast %176 : vector<1x16x32xf32> to vector<16x32xf32>
    %c0_43 = arith.constant 0 : index
    %c0_44 = arith.constant 0 : index
    %178 = vector.load %arg8[%c0_43, %c0_44] : memref<32x128xf32, #tpu.memory_space<vmem>>, vector<32x128xf32>
    %cst_45 = arith.constant dense<0.000000e+00> : vector<16x128xf32>
    %179 = tpu.matmul %177, %178, %cst_45 {dimension_numbers = #tpu.dot_dimension_numbers<[1], [0], [0], [1], [0, 0, 1, 1], [], []>} : vector<16x32xf32>, vector<32x128xf32>, vector<16x128xf32> -> vector<16x128xf32>
    %c0_46 = arith.constant 0 : index
    %c0_47 = arith.constant 0 : index
    %180 = vector.load %arg9[%c0_46, %c0_47] : memref<1x128xf32, #tpu.memory_space<vmem>>, vector<1x128xf32>
    %181 = vector.broadcast %180 : vector<1x128xf32> to vector<16x128xf32>
    %182 = arith.addf %179, %181 : vector<16x128xf32>
    %cst_48 = arith.constant 0.000000e+00 : f32
    %183 = vector.broadcast %cst_48 : f32 to vector<16x128xf32>
    %184 = arith.maximumf %182, %183 : vector<16x128xf32>
    %c0_49 = arith.constant 0 : index
    %c0_50 = arith.constant 0 : index
    %185 = vector.load %arg10[%c0_49, %c0_50] : memref<128x64xf32, #tpu.memory_space<vmem>>, vector<128x64xf32>
    %cst_51 = arith.constant dense<0.000000e+00> : vector<16x64xf32>
    %186 = tpu.matmul %184, %185, %cst_51 {dimension_numbers = #tpu.dot_dimension_numbers<[1], [0], [0], [1], [0, 0, 1, 1], [], []>} : vector<16x128xf32>, vector<128x64xf32>, vector<16x64xf32> -> vector<16x64xf32>
    %187 = vector.shape_cast %186 : vector<16x64xf32> to vector<1x16x64xf32>
    %188 = vector.extract_strided_slice %187 {offsets = [0, 0, 0], sizes = [1, 8, 32], strides = [1, 1, 1]} : vector<1x16x64xf32> to vector<1x8x32xf32>
    %189 = arith.addf %151, %188 : vector<1x8x32xf32>
    %190 = vector.shape_cast %9 : vector<1x32xf32> to vector<1x1x32xf32>
    %191 = vector.broadcast %190 : vector<1x1x32xf32> to vector<1x8x32xf32>
    %192 = arith.addf %189, %191 : vector<1x8x32xf32>
    %193 = vector.extract_strided_slice %187 {offsets = [0, 8, 32], sizes = [1, 8, 32], strides = [1, 1, 1]} : vector<1x16x64xf32> to vector<1x8x32xf32>
    %194 = vector.shape_cast %6 : vector<1x32xf32> to vector<1x1x32xf32>
    %195 = vector.broadcast %194 : vector<1x1x32xf32> to vector<1x8x32xf32>
    %196 = arith.addf %193, %195 : vector<1x8x32xf32>
    %197 = arith.addf %196, %150 : vector<1x8x32xf32>
    %cst_52 = arith.constant dense<0.000000e+00> : vector<1x8xf32>
    %198 = vector.multi_reduction <add>, %197, %cst_52 [2] : vector<1x8x32xf32> to vector<1x8xf32>
    %199 = vector.shape_cast %198 : vector<1x8xf32> to vector<1x8x1xf32>
    %cst_53 = arith.constant 3.200000e+01 : f32
    %200 = vector.broadcast %cst_53 : f32 to vector<1x8x1xf32>
    %201 = arith.divf %199, %200 : vector<1x8x1xf32>
    %202 = vector.broadcast %201 : vector<1x8x1xf32> to vector<1x8x32xf32>
    %203 = arith.subf %197, %202 : vector<1x8x32xf32>
    %204 = arith.mulf %203, %203 : vector<1x8x32xf32>
    %cst_54 = arith.constant dense<0.000000e+00> : vector<1x8xf32>
    %205 = vector.multi_reduction <add>, %204, %cst_54 [2] : vector<1x8x32xf32> to vector<1x8xf32>
    %206 = vector.shape_cast %205 : vector<1x8xf32> to vector<1x8x1xf32>
    %cst_55 = arith.constant 3.200000e+01 : f32
    %207 = vector.broadcast %cst_55 : f32 to vector<1x8x1xf32>
    %208 = arith.divf %206, %207 : vector<1x8x1xf32>
    %209 = vector.broadcast %201 : vector<1x8x1xf32> to vector<1x8x32xf32>
    %210 = arith.subf %197, %209 : vector<1x8x32xf32>
    %cst_56 = arith.constant 9.99999974E-6 : f32
    %211 = vector.broadcast %cst_56 : f32 to vector<1x8x1xf32>
    %212 = arith.addf %208, %211 : vector<1x8x1xf32>
    %213 = math.rsqrt %212 : vector<1x8x1xf32>
    %214 = vector.broadcast %213 : vector<1x8x1xf32> to vector<1x8x32xf32>
    %215 = arith.mulf %210, %214 : vector<1x8x32xf32>
    %216 = vector.shape_cast %7 : vector<1x32xf32> to vector<1x1x32xf32>
    %217 = vector.broadcast %216 : vector<1x1x32xf32> to vector<1x8x32xf32>
    %218 = arith.mulf %215, %217 : vector<1x8x32xf32>
    %219 = vector.shape_cast %8 : vector<1x32xf32> to vector<1x1x32xf32>
    %220 = vector.broadcast %219 : vector<1x1x32xf32> to vector<1x8x32xf32>
    %221 = arith.addf %218, %220 : vector<1x8x32xf32>
    %c0_57 = arith.constant 0 : index
    %c0_58 = arith.constant 0 : index
    %c0_59 = arith.constant 0 : index
    %222 = vector.load %arg12[%c0_57, %c0_58, %c0_59] : memref<1x8x32xf32, #tpu.memory_space<vmem>>, vector<1x8x32xf32>
    tpu.vector_store %arg12[%c0_57, %c0_58, %c0_59], %192 {strides = array<i32>} : memref<1x8x32xf32, #tpu.memory_space<vmem>>, vector<1x8x32xf32>,
    %c0_60 = arith.constant 0 : index
    %c0_61 = arith.constant 0 : index
    %c0_62 = arith.constant 0 : index
    %223 = vector.load %arg13[%c0_60, %c0_61, %c0_62] : memref<1x8x32xf32, #tpu.memory_space<vmem>>, vector<1x8x32xf32>
    tpu.vector_store %arg13[%c0_60, %c0_61, %c0_62], %221 {strides = array<i32>} : memref<1x8x32xf32, #tpu.memory_space<vmem>>, vector<1x8x32xf32>,
    return
  }
  func.func @transform_0(%arg0: i32) -> (i32, i32, i32) {
    %c0_i32 = arith.constant 0 : i32
    %c0_i32_0 = arith.constant 0 : i32
    %c0_i32_1 = arith.constant 0 : i32
    return %arg0, %c0_i32, %c0_i32_0 : i32, i32, i32
  }
  func.func @transform_1(%arg0: i32) -> (i32, i32, i32) {
    %c0_i32 = arith.constant 0 : i32
    %c0_i32_0 = arith.constant 0 : i32
    %c0_i32_1 = arith.constant 0 : i32
    return %arg0, %c0_i32, %c0_i32_0 : i32, i32, i32
  }
  func.func @transform_2(%arg0: i32) -> (i32, i32, i32) {
    %c0_i32 = arith.constant 0 : i32
    %c0_i32_0 = arith.constant 0 : i32
    %c0_i32_1 = arith.constant 0 : i32
    return %arg0, %c0_i32, %c0_i32_0 : i32, i32, i32
  }
  func.func @transform_3(%arg0: i32) -> (i32, i32, i32) {
    %c0_i32 = arith.constant 0 : i32
    %c0_i32_0 = arith.constant 0 : i32
    %c0_i32_1 = arith.constant 0 : i32
    return %arg0, %c0_i32, %c0_i32_0 : i32, i32, i32
  }
  func.func @transform_4(%arg0: i32) -> (i32, i32) {
    %c0_i32 = arith.constant 0 : i32
    %c0_i32_0 = arith.constant 0 : i32
    %c0_i32_1 = arith.constant 0 : i32
    return %c0_i32, %c0_i32_0 : i32, i32
  }
  func.func @transform_5(%arg0: i32) -> (i32, i32) {
    %c0_i32 = arith.constant 0 : i32
    %c0_i32_0 = arith.constant 0 : i32
    %c0_i32_1 = arith.constant 0 : i32
    return %c0_i32, %c0_i32_0 : i32, i32
  }
  func.func @transform_6(%arg0: i32) -> (i32, i32) {
    %c0_i32 = arith.constant 0 : i32
    %c0_i32_0 = arith.constant 0 : i32
    %c0_i32_1 = arith.constant 0 : i32
    return %c0_i32, %c0_i32_0 : i32, i32
  }
  func.func @transform_7(%arg0: i32) -> (i32, i32) {
    %c0_i32 = arith.constant 0 : i32
    %c0_i32_0 = arith.constant 0 : i32
    %c0_i32_1 = arith.constant 0 : i32
    return %c0_i32, %c0_i32_0 : i32, i32
  }
  func.func @transform_8(%arg0: i32) -> (i32, i32) {
    %c0_i32 = arith.constant 0 : i32
    %c0_i32_0 = arith.constant 0 : i32
    %c0_i32_1 = arith.constant 0 : i32
    return %c0_i32, %c0_i32_0 : i32, i32
  }
  func.func @transform_9(%arg0: i32) -> (i32, i32) {
    %c0_i32 = arith.constant 0 : i32
    %c0_i32_0 = arith.constant 0 : i32
    %c0_i32_1 = arith.constant 0 : i32
    return %c0_i32, %c0_i32_0 : i32, i32
  }
  func.func @transform_10(%arg0: i32) -> (i32, i32) {
    %c0_i32 = arith.constant 0 : i32
    %c0_i32_0 = arith.constant 0 : i32
    %c0_i32_1 = arith.constant 0 : i32
    return %c0_i32, %c0_i32_0 : i32, i32
  }
  func.func @transform_11(%arg0: i32) -> (i32, i32, i32) {
    %c0_i32 = arith.constant 0 : i32
    %c0_i32_0 = arith.constant 0 : i32
    %c0_i32_1 = arith.constant 0 : i32
    return %arg0, %c0_i32, %c0_i32_0 : i32, i32, i32
  }
  func.func @transform_12(%arg0: i32) -> (i32, i32, i32) {
    %c0_i32 = arith.constant 0 : i32
    %c0_i32_0 = arith.constant 0 : i32
    %c0_i32_1 = arith.constant 0 : i32
    return %arg0, %c0_i32, %c0_i32_0 : i32, i32, i32
  }
}

</mosaic_0001>

<bundles_post_ra>
// kernel: tpu_custom_call.1
= control target key start
LH: loop header
LB: loop body
LE: loop exit
PB: predicated region body
PF: predicated region fallthrough
CT: control target
= control target key end

     0   :  { %s2374_s0 = inlined_call_operand.vmem [shape: f32[2,8,32], index: 0, kind: input, shape index: {}]   ;;  %s2375_s1 = inlined_call_operand.vmem [shape: f32[2,8,32], index: 1, kind: input, shape index: {}]   ;;  %s2376_s2 = inlined_call_operand.vmem [shape: f32[2,1,16], index: 2, kind: input, shape index: {}]   ;;  %s2377_s3 = inlined_call_operand.vmem [shape: f32[2,1,16], index: 3, kind: input, shape index: {}]   ;;  %s2378_s4 = inlined_call_operand.vmem [shape: f32[32,96], index: 4, kind: input, shape index: {}]   ;;  %s2379_s5 = inlined_call_operand.vmem [shape: f32[1,96], index: 5, kind: input, shape index: {}]   ;;  %s2380_s6 = inlined_call_operand.vmem [shape: f32[32,32], index: 6, kind: input, shape index: {}]   ;;  %s2381_s7 = inlined_call_operand.vmem [shape: f32[32,128], index: 7, kind: input, shape index: {}]   ;;  %s2382_s8 = inlined_call_operand.vmem [shape: f32[1,128], index: 8, kind: input, shape index: {}]   ;;  %s2383_s9 = inlined_call_operand.vmem [shape: f32[128,64], index: 9, kind: input, shape index: {}]   ;;  %s2384_s10 = inlined_call_operand.vmem [shape: f32[9,32], index: 10, kind: input, shape index: {}]   ;;  %s2385_s11 = inlined_call_operand.hbm [shape: f32[2,8,32], index: 11, kind: output, shape index: {0}]   ;;  %s2386_s12 = inlined_call_operand.hbm [shape: f32[2,8,32], index: 12, kind: output, shape index: {1}]  }
   0x1   :  { %2394 = sst [smem:[#allocation8_spill]] %s2374_s0 }
   0x2   :  { %2395 = sst [smem:[#allocation9_spill]] %s2375_s1 }
   0x3   :  { %2396 = sst [smem:[#allocation10_spill]] %s2376_s2 }
   0x4   :  { %2397 = sst [smem:[#allocation11_spill]] %s2377_s3 }
   0x5   :  { %2398 = sst [smem:[#allocation12_spill]] %s2378_s4 }
   0x6   :  { %18 = vsyncpa [#allocation3], 0 }
   0x7   :  { %20 = vsyncpa [#allocation3 + $0x1], 0 }
   0x8   :  { %21 = vsyncpa [#allocation5], 0 }
   0x9   :  { %23 = vsyncpa [#allocation5 + $0x1], 0  ;;  %s1902_s21 = smov 0   ;;  %s1904_s22 = smov 0  }
   0xa   :  { %s1906_s23 = smov 0   ;;  %s1908_s24 = smov 0  }
   0xb LB: > { %s1923_s25 = sadd.s32 4294967295, %s1828_s24   ;;  %s1563_s26 = sadd.s32 4294967294, %s1828_s24   ;;  %s1828_s24 = sphi %s1908_s24, %s2418_s24   ;;  %s1824_s23 = sphi %s1906_s23, %s2417_s23   ;;  %s1820_s22 = sphi %s1904_s22, %s2416_s22   ;;  %s1816_s21 = sphi %s1902_s21, %s2415_s21  }
   0xc   : > { %s1927_s27 = sadd.s32 1, %s1828_s24   ;;  %s287_s28 = sadd.s32 1, %s1824_s23 }
   0xd   : > { %s284_s29 = ssub.s32 %s1828_s24, %s1927_s27  ;;  %p297_p0 = scmp.ne.s32.totalorder %s1824_s23, %s1820_s22 }
   0xe   : > { %p285_p1 = scmp.eq.s32.totalorder %s284_s29, 0  ;;  %p298_p2 = scmp.eq.s32.totalorder %s1923_s25, 1 }
   0xf   : > { %p303_p3 = scmp.ne.s32.totalorder %s1820_s22, %s1816_s21  ;;  %p304_p4 = scmp.eq.s32.totalorder %s1563_s26, 1 }
  0x10   : > { %s1938_s30 = scalar_select %p285_p1, %s1824_s23, %s287_s28  }
  0x11   : > { %p1940_p5 = por %p298_p2, %p297_p0  ;;  %p1944_p6 = por %p304_p4, %p303_p3 }
  0x12   : > { %p1566_p7 = scmp.ge.s32.totalorder %s1828_s24, 1  ;;  %p395_p8 = scmp.lt.s32.totalorder %s1828_s24, 3 }
  0x14   : > { %p396_p9 = pnand %p1566_p7, %p395_p8 }
  0x15   : > { %p451_p10 = scmp.lt.s32.totalorder (!%p396_p9), %s1923_s25, 1  ;;  %s2401_s0 = sld [smem:[#allocation8_spill]] (!%p396_p9) }
  0x16   : > { %399 = sbr.rel (%p396_p9) target bundleno = 2845 (0xb1d), region = 64  ;;  %s2402_s4 = sld [smem:[#allocation12_spill]] (!%p396_p9) }
  0x17   : > { %s2404_s1 = sld [smem:[#allocation9_spill]] (!%p396_p9)  ;;  %s1831_s20 = smov (!%p396_p9), 104  }
  0x18   : > { %s1832_s26 = smov (!%p396_p9), 112   ;;  %s2388_s28 = smov (!%p396_p9), 96  }
  0x19   : > { %s2405_s2 = sld [smem:[#allocation10_spill]] (!%p396_p9)  ;;  %s2294_s29 = sand.u32 (!%p396_p9), 1, %s1820_s22  }
  0x1a   : > { %s2406_s3 = sld [smem:[#allocation11_spill]] (!%p396_p9) }
  0x1b   : > { %s1952_s15 = scalar_select %p451_p10, %s1923_s25, 1  ;;  %vm469_vm0 = vcmask 261120   ;;  %v1830_v2 = vmov 32.0   ;;  %v1981_v26 = vld [vmem:[%s2384_s10] sm:$0xff]  ;;  %vm577_vm5 = vcmask 64512   ;;  %vm730_vm6 = vcmask 130048  }
  0x1c   : > { %1689 = vrcp.f32 %v1830_v2  ;;  %v506_v14 = vld [vmem:[%s2402_s4 + $0x18] sm:$0xff]  ;;  %v505_v15 = vld [vmem:[%s2402_s4 + $0x10] sm:$0xff]  ;;  %v504_v16 = vld [vmem:[%s2402_s4 + $0x8] sm:$0xff]  ;;  %v499_v28 = vperm.slane %v1981_v26, 0  ;;  %v501_v31 = vperm.slane %v1981_v26, 1 }
  0x1d   : > { %s2387_s16 = sshll.u32 %s1952_s15, 3  ;;  %529 = vmatpush.msra.mxu0 %v506_v14  ;;  %v503_v17 = vld [vmem:[%s2402_s4] sm:$0xff] }
  0x1e   : > { %s454_s19 = scalar_lea.vmem %s2401_s0, %s2387_s16  ;;  %s2403_s16 = sshll.u32 %s1952_s15, 3  ;;  %v1684_v36 = vld [vmem:[%s2379_s5] ss:$0 sm:$0xff] }
  0x1f   : > { %v467_v0 = vld [vmem:[%s454_s19] sm:$0xff]  ;;  %530 = vmatpush.msra.mxu0 %v505_v15  ;;  %s458_s17 = scalar_lea.vmem %s2404_s1, %s2403_s16  ;;  %s1833_s16 = smov 120  }
  0x20   : > { %v470_v1 = vsel %vm469_vm0, %v467_v0, 0.0  ;;  %v1998_v34 = vld [vmem:[%s458_s17] sm:$0xff]  ;;  %s461_s18 = scalar_lea.vmem %s2405_s2, %s1952_s15  ;;  %s1754_s0 = scalar_lea.hbm %s2385_s11, 16 }
  0x21   : > { %471 = vadd.xlane.f32.xlu0 %v470_v1  ;;  %531 = vmatpush.msra.mxu0 %v504_v16  ;;  %v1685_v54 = vld [vmem:[%s461_s18] ss:$0 sm:$0xff]  ;;  %s2412_s18 = smov 96  }
  0x22   : > { %v1690_v3 = vpop.eup %1689 }
  0x23   : > { %v474_v4 = vmul.f32 32.0, %v1690_v3  ;;  %vm478_vm1 = vweird.f32 %v1690_v3  ;;  %532 = vmatpush.msra.mxu0 %v503_v17 }
  0x25   : > { %v475_v5 = vsub.f32 1.0, %v474_v4 }
  0x27   : > { %v476_v6 = vmul.f32 %v1690_v3, %v475_v5 }
  0x29   : > { %v477_v7 = vadd.f32 %v1690_v3, %v476_v6 }
  0x2b   : > { %v1961_v8 = vsel %vm478_vm1, %v1690_v3, %v477_v7 }
  0x94   : > { %v472_v9 = vpop.xlane.xlu0 %471 }
  0x95   : > { %v480_v10 = vmul.f32 %v1961_v8, %v472_v9 }
  0x97   : > { %v481_v11 = vsub.f32 %v467_v0, %v480_v10 }
  0x99   : > { %v482_v12 = vmul.f32 %v481_v11, %v481_v11 }
  0x9b   : > { %v483_v13 = vsel %vm469_vm0, %v482_v12, 0.0 }
  0x9c   : > { %484 = vadd.xlane.f32.xlu0 %v483_v13 }
 0x10f   : > { %v485_v18 = vpop.xlane.xlu0 %484 }
 0x110   : > { %v486_v19 = vmul.f32 %v485_v18, %v1961_v8 }
 0x112   : > { %v487_v20 = vadd.f32 1e-05, %v486_v19 }
 0x114   : > { %1691 = vrsqrt.f32 %v487_v20  ;;  %vm494_vm3 = vweird.f32 %v487_v20 }
 0x11a   : > { %v1692_v21 = vpop.eup %1691 }
 0x11b   : > { %v489_v22 = vmul.f32 %v1692_v21, %v487_v20  ;;  %vm495_vm2 = vweird.f32 %v1692_v21 }
 0x11c   : > { %vm496_vm4 = vmor %vm494_vm3, %vm495_vm2 }
 0x11d   : > { %v490_v23 = vmul.f32 %v1692_v21, %v489_v22 }
 0x11f   : > { %v491_v24 = vmul.f32 0.5, %v490_v23 }
 0x121   : > { %v492_v25 = vsub.f32 1.5, %v491_v24 }
 0x123   : > { %v493_v27 = vmul.f32 %v1692_v21, %v492_v25 }
 0x125   : > { %v497_v29 = vsel %vm496_vm4, %v1692_v21, %v493_v27 }
 0x126   : > { %v498_v30 = vmul.f32 %v497_v29, %v481_v11 }
 0x128   : > { %v500_v32 = vmul.f32 %v499_v28, %v498_v30 }
 0x12a   : > { %v1989_v33 = vadd.f32 %v501_v31, %v500_v32 }
 0x12c   : > { %1571 = vmatmul.msk.f32.vlgmr.msra.gmra.mxu0 %vm469_vm0, %v1989_v33 }
 0x134   : > { %1572 = vmatmul.msk.f32.gmra.mxu0 %vm469_vm0, %v1998_v34 }
 0x1a9   : > { %v534_v35 = vpop.f32.mrf.mxu0 }
 0x1aa   : > { %v2010_v39 = vadd.f32 %v1684_v36, %v534_v35 }
 0x1b1   : > { %v537_v37 = vpop.f32.mrf.mxu0 }
 0x1b2   : > { %v2005_v38 = vadd.f32 %v1684_v36, %v537_v37 }
 0x1b4   : > { %552 = vrot.lane.b32.xlu0 %v2005_v38, %s1831_s20  ;;  %548 = vrot.lane.b32.xlu2 %v2005_v38, %s1832_s26 }
 0x1b5   : > { %544 = vrot.lane.b32.xlu1 %v2005_v38, %s1833_s16 }
 0x1bc   : > { %573 = vrot.lane.b32.xlu0 %v2010_v39, %s2388_s28  ;;  %546 = vrot.lane.b32.xlu2 %v2010_v39, %s1832_s26  ;;  %s464_s26 = scalar_lea.vmem %s2406_s3, %s1952_s15  ;;  %s2390_s15 = smov 32  }
 0x1bd   : > { %542 = vrot.lane.b32.xlu1 %v2010_v39, %s1833_s16  ;;  %s1835_s16 = smov 64   ;;  %v1686_v27 = vld [vmem:[%s464_s26] ss:$0 sm:$0xff] }
 0x1c4   : > { %550 = vrot.lane.b32.xlu2 %v2010_v39, %s1831_s20  ;;  %s2411_s20 = smov 32  }
 0x20e   : > { %v2017_v40 = vpop.permute.xlu2 %548 }
 0x20f   : > { %646 = vrot.lane.b32.xlu2 %v2017_v40, %s2388_s28 }
 0x216   : > { %v2021_v41 = vpop.permute.xlu2 %546 }
 0x217   : > { %575 = vrot.lane.b32.xlu2 %v2005_v38, %s2388_s28  ;;  %v1664_v15 = vpack.i.bf16 %v2021_v41, %v2017_v40 }
 0x21e   : > { %v2025_v42 = vpop.permute.xlu2 %550 }
 0x21f   : > { %679 = vrot.lane.b32.xlu2 %v2025_v42, %s2388_s28 }
 0x226   : > { %v2036_v45 = vpop.permute.xlu0 %552 }
 0x227   : > { %v545_v43 = vpop.permute.xlu1 %544 }
 0x228   : > { %611 = vrot.lane.b32.xlu1 %v545_v43, %s2388_s28  ;;  %v1669_v9 = vpack.i.bf16 %v545_v43, %v2005_v38 }
 0x22e   : > { %v574_v48 = vpop.permute.xlu0 %573 }
 0x22f   : > { %v2030_v44 = vpop.permute.xlu1 %542 }
 0x230   : > { %609 = vrot.lane.b32.xlu1 %v2030_v44, %s2388_s28 }
 0x238   : > { %644 = vrot.lane.b32.xlu1 %v2021_v41, %s2388_s28 }
 0x240   : > { %681 = vrot.lane.b32.xlu1 %v2036_v45, %s2388_s28  ;;  %s2392_s28 = sshll.u32 %s2294_s29, 3 }
 0x241   : > { %s2303_s17 = scalar_lea.vmem [#allocation2], %s2392_s28  ;;  %s1407_s28 = scalar_lea.sflag [#allocation3], %s2294_s29 }
 0x242   : > { %s1424_s19 = sshll.u32 %s2303_s17, 4  ;;  %s1425_s19 = int_to_ptr.vmem [resolvable:$true] %s1424_s19 }
 0x269   : > { %v647_v46 = vpop.permute.xlu2 %646 }
 0x271   : > { %v576_v47 = vpop.permute.xlu2 %575 }
 0x272   : > { %1573 = vmatpush.xpose.msk.msra.mxu1 %vm577_vm5, %v576_v47 }
 0x276   : > { %1574 = vmatpush.xpose.msk.msra.mxu1 %vm577_vm5, %v574_v48 }
 0x279   : > { %1575 = vmatmul.msk.f32.vlgmr.msra.gmra.mxu1 %vm577_vm5, %v2010_v39  ;;  %v680_v53 = vpop.permute.xlu2 %679 }
 0x281   : > { %1576 = vmatmul.msk.f32.gmra.mxu1 %vm577_vm5, %v2005_v38 }
 0x29a   : > { %v612_v49 = vpop.permute.xlu1 %611 }
 0x29b   : > { %1577 = vmatpush.xpose.msk.msra.mxu3 %vm577_vm5, %v612_v49 }
 0x2a2   : > { %v610_v50 = vpop.permute.xlu1 %609 }
 0x2a3   : > { %1578 = vmatpush.xpose.msk.msra.mxu3 %vm577_vm5, %v610_v50 }
 0x2a6   : > { %1579 = vmatmul.msk.f32.vlgmr.msra.gmra.mxu3 %vm577_vm5, %v2030_v44 }
 0x2a7   : > { %1581 = vmatpush.xpose.msk.msrb.mxu3 %vm577_vm5, %v647_v46 }
 0x2aa   : > { %v645_v51 = vpop.permute.xlu1 %644 }
 0x2ab   : > { %1582 = vmatpush.xpose.msk.msrb.mxu3 %vm577_vm5, %v645_v51 }
 0x2ae   : > { %1580 = vmatmul.msk.f32.gmra.mxu3 %vm577_vm5, %v545_v43 }
 0x2b2   : > { %v682_v52 = vpop.permute.xlu1 %681 }
 0x2b3   : > { %1585 = vmatpush.xpose.msk.msrb.mxu0 %vm577_vm5, %v682_v52 }
 0x2b6   : > { %1583 = vmatmul.msk.f32.vlgmr.msrb.gmra.mxu3 %vm577_vm5, %v2021_v41  ;;  %v1679_v41 = vpack.i.bf16 %v2025_v42, %v2036_v45 }
 0x2b7   : > { %1586 = vmatpush.xpose.msk.msrb.mxu0 %vm577_vm5, %v680_v53 }
 0x2ba   : > { %1587 = vmatmul.msk.f32.vlgmr.msrb.gmra.mxu0 %vm577_vm5, %v2025_v42  ;;  %v1674_v42 = vpack.i.bf16 %v2030_v44, %v2010_v39 }
 0x2be   : > { %1584 = vmatmul.msk.f32.gmra.mxu3 %vm577_vm5, %v2017_v40 }
 0x2c2   : > { %1588 = vmatmul.msk.f32.gmra.mxu0 %vm577_vm5, %v2036_v45 }
 0x2f6   : > { %v603_v55 = vpop.f32.mrf.mxu1 }
 0x2f7   : > { %v714_v56 = vmul.f32 0.35355338, %v603_v55 }
 0x2f9   : > { %v722_v57 = vadd.f32 %v1685_v54, %v714_v56 }
 0x2fb   : > { %v731_v58 = vsel %vm730_vm6, %v722_v57, -inf }
 0x2fc   : > { %732 = vmax.xlane.f32.xlu1 %v731_v58 }
 0x2fe   : > { %v606_v45 = vpop.f32.mrf.mxu1 }
 0x2ff   : > { %v715_v52 = vmul.f32 0.35355338, %v606_v45 }
 0x301   : > { %v2112_v53 = vadd.f32 %v1686_v27, %v715_v52 }
 0x329   : > { %v638_v59 = vpop.f32.mrf.mxu3 }
 0x32a   : > { %v716_v60 = vmul.f32 0.35355338, %v638_v59 }
 0x32c   : > { %v724_v61 = vadd.f32 %v1685_v54, %v716_v60 }
 0x32e   : > { %v737_v62 = vsel %vm730_vm6, %v724_v61, -inf }
 0x32f   : > { %738 = vmax.xlane.f32.xlu2 %v737_v62 }
 0x331   : > { %v641_v63 = vpop.f32.mrf.mxu3 }
 0x332   : > { %v717_v24 = vmul.f32 0.35355338, %v641_v63 }
 0x334   : > { %v725_v30 = vadd.f32 %v1686_v27, %v717_v24 }
 0x336   : > { %v740_v40 = vsel %vm730_vm6, %v725_v30, -inf }
 0x337   : > { %v708_v0 = vpop.f32.mrf.mxu0 }
 0x338   : > { %v720_v1 = vmul.f32 0.35355338, %v708_v0 }
 0x339   : > { %v673_v2 = vpop.f32.mrf.mxu3 }
 0x33a   : > { %v728_v3 = vadd.f32 %v1685_v54, %v720_v1  ;;  %v718_v4 = vmul.f32 0.35355338, %v673_v2 }
 0x33c   : > { %v749_v5 = vsel %vm730_vm6, %v728_v3, -inf  ;;  %v726_v6 = vadd.f32 %v1685_v54, %v718_v4  ;;  %v734_v54 = vsel %vm730_vm6, %v2112_v53, -inf }
 0x33d   : > { %750 = vmax.xlane.f32.xlu0 %v749_v5 }
 0x33e   : > { %v743_v7 = vsel %vm730_vm6, %v726_v6, -inf }
 0x33f   : > { %v711_v35 = vpop.f32.mrf.mxu0 }
 0x340   : > { %v721_v38 = vmul.f32 0.35355338, %v711_v35 }
 0x341   : > { %v676_v55 = vpop.f32.mrf.mxu3 }
 0x342   : > { %v2100_v43 = vadd.f32 %v1686_v27, %v721_v38  ;;  %v719_v56 = vmul.f32 0.35355338, %v676_v55 }
 0x344   : > { %v752_v48 = vsel %vm730_vm6, %v2100_v43, -inf  ;;  %v2116_v58 = vadd.f32 %v1686_v27, %v719_v56 }
 0x345   : > { %744 = vmax.xlane.f32.xlu0 %v743_v7 }
 0x346   : > { %v746_v59 = vsel %vm730_vm6, %v2116_v58, -inf }
 0x359   : > { %1670 = vrot.lane.b32.xlu0 %v1669_v9, %s1835_s16 }
 0x36f   : > { %v733_v10 = vpop.xlane.xlu1 %732 }
 0x370   : > { %v755_v11 = vsub.f32 %v722_v57, %v733_v10 }
 0x372   : > { %v763_v12 = vmul.f32 1.442695, %v755_v11 }
 0x374   : > { %1693 = vpow2.f32 %v763_v12 }
 0x37a   : > { %v2077_v13 = vpop.eup %1693 }
 0x37b   : > { %v779_v14 = vsel %vm730_vm6, %v2077_v13, 0.0 }
 0x37c   : > { %780 = vadd.xlane.f32.xlu1 %v779_v14 }
 0x395   : > { %1665 = vrot.lane.b32.xlu1 %v1664_v15, %s1835_s16 }
 0x3a2   : > { %v739_v16 = vpop.xlane.xlu2 %738 }
 0x3a3   : > { %v757_v17 = vsub.f32 %v724_v61, %v739_v16 }
 0x3a5   : > { %v767_v18 = vmul.f32 1.442695, %v757_v17 }
 0x3a7   : > { %1695 = vpow2.f32 %v767_v18 }
 0x3ad   : > { %v2084_v19 = vpop.eup %1695 }
 0x3ae   : > { %v785_v20 = vsel %vm730_vm6, %v2084_v19, 0.0 }
 0x3af   : > { %786 = vadd.xlane.f32.xlu0 %v785_v20 }
 0x3b0   : > { %v751_v21 = vpop.xlane.xlu0 %750 }
 0x3b1   : > { %v761_v22 = vsub.f32 %v728_v3, %v751_v21 }
 0x3b3   : > { %v775_v23 = vmul.f32 1.442695, %v761_v22 }
 0x3b5   : > { %1697 = vpow2.f32 %v775_v23 }
 0x3b8   : > { %v745_v25 = vpop.xlane.xlu0 %744 }
 0x3b9   : > { %v759_v29 = vsub.f32 %v726_v6, %v745_v25 }
 0x3bb   : > { %v2093_v32 = vpop.eup %1697  ;;  %v771_v36 = vmul.f32 1.442695, %v759_v29 }
 0x3bc   : > { %v797_v37 = vsel %vm730_vm6, %v2093_v32, 0.0 }
 0x3bd   : > { %1699 = vpow2.f32 %v771_v36  ;;  %798 = vadd.xlane.f32.xlu2 %v797_v37 }
 0x3bf   : > { %741 = vmax.xlane.f32.xlu1 %v740_v40 }
 0x3c3   : > { %v2102_v46 = vpop.eup %1699  ;;  %1680 = vrot.lane.b32.xlu0 %v1679_v41, %s1835_s16 }
 0x3c4   : > { %v791_v47 = vsel %vm730_vm6, %v2102_v46, 0.0 }
 0x3c5   : > { %792 = vadd.xlane.f32.xlu2 %v791_v47 }
 0x3c7   : > { %753 = vmax.xlane.f32.xlu1 %v752_v48 }
 0x3cb   : > { %v1671_v49 = vpop.permute.xlu0 %1670 }
 0x3cc   : > { %v1672_v50 = vunpack.i.l.bf16 %v1671_v49  ;;  %v1673_v51 = vunpack.i.h.bf16 %v1671_v49 }
 0x3ce   : > { %949 = vmatpush.msrb.mxu1 %v1672_v50  ;;  %984 = vmatpush.msra.mxu2 %v1673_v51 }
 0x3dd   : > { %1675 = vrot.lane.b32.xlu2 %v1674_v42, %s1835_s16  ;;  %s2393_s16 = sshll.u32 %s1923_s25, 3 }
 0x3ed   : > { %735 = vmax.xlane.f32.xlu0 %v734_v54 }
 0x3ef   : > { %v781_v57 = vpop.xlane.xlu1 %780 }
 0x3f0   : > { %1701 = vrcp.f32 %v781_v57  ;;  %vm808_vm7 = vweird.f32 %v781_v57  ;;  %v812_v21 = vand.u32 2147483647, %v781_v57  ;;  %v814_v22 = vand.u32 2147483648, %v781_v57 }
 0x3f2   : > { %vm813_vm14 = vcmp.eq.f32.partialorder %v812_v21, 8.507059e+37  ;;  %v815_v48 = vor.u32 1.1754944e-38, %v814_v22 }
 0x3f6   : > { %v1702_v62 = vpop.eup %1701 }
 0x3f7   : > { %v804_v0 = vmul.f32 %v1702_v62, %v781_v57  ;;  %vm809_vm8 = vweird.f32 %v1702_v62 }
 0x3f8   : > { %vm2123_vm10 = vmor %vm808_vm7, %vm809_vm8 }
 0x3f9   : > { %v805_v2 = vsub.f32 1.0, %v804_v0 }
 0x3fb   : > { %v806_v6 = vmul.f32 %v1702_v62, %v805_v2 }
 0x3fd   : > { %v807_v15 = vadd.f32 %v1702_v62, %v806_v6 }
 0x3ff   : > { %v811_v36 = vsel %vm2123_vm10, %v1702_v62, %v807_v15 }
 0x400   : > { %v816_v52 = vsel %vm813_vm14, %v815_v48, %v811_v36 }
 0x406   : > { %747 = vmax.xlane.f32.xlu2 %v746_v59 }
 0x407   : > { %v1666_v39 = vpop.permute.xlu1 %1665 }
 0x408   : > { %v1667_v44 = vunpack.i.l.bf16 %v1666_v39  ;;  %v1668_v60 = vunpack.i.h.bf16 %v1666_v39 }
 0x40a   : > { %1019 = vmatpush.msra.mxu3 %v1667_v44 }
 0x40c   : > { %1020 = vmatpush.msra.mxu3 %v1668_v60 }
 0x422   : > { %v787_v61 = vpop.xlane.xlu0 %786 }
 0x423   : > { %1703 = vrcp.f32 %v787_v61  ;;  %v842_v23 = vand.u32 2147483648, %v787_v61  ;;  %vm836_vm11 = vweird.f32 %v787_v61  ;;  %v840_v29 = vand.u32 2147483647, %v787_v61 }
 0x425   : > { %v843_v49 = vor.u32 1.1754944e-38, %v842_v23  ;;  %vm841_vm1 = vcmp.eq.f32.partialorder %v840_v29, 8.507059e+37 }
 0x429   : > { %v1704_v63 = vpop.eup %1703 }
 0x42a   : > { %v832_v1 = vmul.f32 %v1704_v63, %v787_v61  ;;  %vm837_vm9 = vweird.f32 %v1704_v63  ;;  %v915_v61 = vmul.f32 %v2077_v13, %v816_v52 }
 0x42b   : > { %vm2130_vm12 = vmor %vm836_vm11, %vm837_vm9 }
 0x42c   : > { %v833_v3 = vsub.f32 1.0, %v832_v1 }
 0x42e   : > { %v834_v9 = vmul.f32 %v1704_v63, %v833_v3 }
 0x430   : > { %v799_v4 = vpop.xlane.xlu2 %798  ;;  %v835_v20 = vadd.f32 %v1704_v63, %v834_v9 }
 0x431   : > { %1705 = vrcp.f32 %v799_v4  ;;  %v896_v40 = vand.u32 2147483647, %v799_v4  ;;  %vm892_vm15 = vweird.f32 %v799_v4 }
 0x432   : > { %v742_v5 = vpop.xlane.xlu1 %741  ;;  %v839_v41 = vsel %vm2130_vm12, %v1704_v63, %v835_v20 }
 0x433   : > { %v758_v7 = vsub.f32 %v725_v30, %v742_v5  ;;  %v898_v30 = vand.u32 2147483648, %v799_v4  ;;  %v844_v54 = vsel %vm841_vm1, %v843_v49, %v839_v41  ;;  %vm897_vm3 = vcmp.eq.f32.partialorder %v896_v40, 8.507059e+37 }
 0x434   : > { %v917_v62 = vmul.f32 %v2084_v19, %v844_v54 }
 0x435   : > { %v769_v10 = vmul.f32 1.442695, %v758_v7  ;;  %v1681_v11 = vpop.permute.xlu0 %1680  ;;  %v899_v45 = vor.u32 1.1754944e-38, %v898_v30 }
 0x436   : > { %v1682_v12 = vunpack.i.l.bf16 %v1681_v11  ;;  %v1683_v17 = vunpack.i.h.bf16 %v1681_v11 }
 0x437   : > { %v1706_v14 = vpop.eup %1705  ;;  %1707 = vpow2.f32 %v769_v10 }
 0x438   : > { %v888_v16 = vmul.f32 %v1706_v14, %v799_v4  ;;  %v2120_v18 = vpop.xlane.xlu2 %792  ;;  %1054 = vmatpush.msra.mxu0 %v1682_v12  ;;  %vm893_vm13 = vweird.f32 %v1706_v14 }
 0x439   : > { %1709 = vrcp.f32 %v2120_v18  ;;  %vm894_vm2 = vmor %vm892_vm15, %vm893_vm13  ;;  %v870_v0 = vand.u32 2147483648, %v2120_v18  ;;  %v868_v2 = vand.u32 2147483647, %v2120_v18  ;;  %vm864_vm7 = vweird.f32 %v2120_v18 }
 0x43a   : > { %v889_v25 = vsub.f32 1.0, %v888_v16  ;;  %1055 = vmatpush.msra.mxu0 %v1683_v17  ;;  %v754_v27 = vpop.xlane.xlu1 %753 }
 0x43b   : > { %v762_v35 = vsub.f32 %v2100_v43, %v754_v27  ;;  %vm869_vm9 = vcmp.eq.f32.partialorder %v868_v2, 8.507059e+37 }
 0x43c   : > { %v890_v38 = vmul.f32 %v1706_v14, %v889_v25 }
 0x43d   : > { %v2136_v47 = vpop.eup %1707  ;;  %v777_v50 = vmul.f32 1.442695, %v762_v35 }
 0x43e   : > { %v891_v43 = vadd.f32 %v1706_v14, %v890_v38  ;;  %v788_v51 = vsel %vm730_vm6, %v2136_v47, 0.0 }
 0x43f   : > { %v1710_v42 = vpop.eup %1709  ;;  %1711 = vpow2.f32 %v777_v50  ;;  %789 = vadd.xlane.f32.xlu2 %v788_v51 }
 0x440   : > { %v895_v55 = vsel %vm894_vm2, %v1706_v14, %v891_v43  ;;  %v860_v56 = vmul.f32 %v1710_v42, %v2120_v18  ;;  %v1676_v57 = vpop.permute.xlu2 %1675  ;;  %vm865_vm4 = vweird.f32 %v1710_v42  ;;  %v1066_v18 = vld [vmem:[%s2380_s6 + $0x18] sm:$0xff] }
 0x441   : > { %v900_v59 = vsel %vm897_vm3, %v899_v45, %v895_v55  ;;  %v1677_v39 = vunpack.i.l.bf16 %v1676_v57  ;;  %v1678_v44 = vunpack.i.h.bf16 %v1676_v57  ;;  %vm866_vm8 = vmor %vm864_vm7, %vm865_vm4  ;;  %1177 = vmatpush.msrb.mxu0 %v1066_v18  ;;  %v1064_v55 = vld [vmem:[%s2380_s6 + $0x8] sm:$0xff] }
 0x442   : > { %v861_v60 = vsub.f32 1.0, %v860_v56  ;;  %v921_v63 = vmul.f32 %v2093_v32, %v900_v59  ;;  %v871_v32 = vor.u32 1.1754944e-38, %v870_v0 }
 0x443   : > { %950 = vmatpush.msrb.mxu1 %v1677_v39  ;;  %985 = vmatpush.msra.mxu2 %v1678_v44 }
 0x444   : > { %v862_v1 = vmul.f32 %v1710_v42, %v861_v60  ;;  %1589 = vmatmul.msk.f32.vlgmr.msrb.gmra.mxu1 %vm730_vm6, %v915_v61  ;;  %1591 = vmatmul.msk.f32.vlgmr.msra.gmra.mxu2 %vm730_vm6, %v917_v62  ;;  %v1065_v62 = vld [vmem:[%s2380_s6 + $0x10] sm:$0xff] }
 0x445   : > { %v2148_v3 = vpop.eup %1711  ;;  %1595 = vmatmul.msk.f32.vlgmr.msra.gmra.mxu0 %vm730_vm6, %v921_v63  ;;  %1088 = vmatpush.msra.mxu1 %v1064_v55 }
 0x446   : > { %v863_v13 = vadd.f32 %v1710_v42, %v862_v1  ;;  %v800_v19 = vsel %vm730_vm6, %v2148_v3, 0.0  ;;  %1146 = vmatpush.msrb.mxu3 %v1065_v62 }
 0x447   : > { %801 = vadd.xlane.f32.xlu2 %v800_v19 }
 0x448   : > { %v867_v4 = vsel %vm866_vm8, %v1710_v42, %v863_v13 }
 0x449   : > { %v872_v5 = vsel %vm869_vm9, %v871_v32, %v867_v4 }
 0x44a   : > { %v919_v6 = vmul.f32 %v2102_v46, %v872_v5 }
 0x44c   : > { %1593 = vmatmul.msk.f32.vlgmr.msra.gmra.mxu3 %vm730_vm6, %v919_v6 }
 0x460   : > { %v736_v7 = vpop.xlane.xlu0 %735 }
 0x461   : > { %v756_v9 = vsub.f32 %v2112_v53, %v736_v7  ;;  %v1063_v53 = vld [vmem:[%s2380_s6] sm:$0xff] }
 0x462   : > { %1117 = vmatpush.msrb.mxu2 %v1063_v53 }
 0x463   : > { %v765_v10 = vmul.f32 1.442695, %v756_v9 }
 0x465   : > { %1713 = vpow2.f32 %v765_v10 }
 0x46b   : > { %v2157_v11 = vpop.eup %1713 }
 0x46c   : > { %v782_v12 = vsel %vm730_vm6, %v2157_v11, 0.0 }
 0x46d   : > { %783 = vadd.xlane.f32.xlu1 %v782_v12 }
 0x479   : > { %v748_v14 = vpop.xlane.xlu2 %747 }
 0x47a   : > { %v760_v15 = vsub.f32 %v2116_v58, %v748_v14 }
 0x47c   : > { %v773_v16 = vmul.f32 1.442695, %v760_v15 }
 0x47e   : > { %1715 = vpow2.f32 %v773_v16 }
 0x484   : > { %v2162_v17 = vpop.eup %1715 }
 0x485   : > { %v794_v46 = vsel %vm730_vm6, %v2162_v17, 0.0 }
 0x486   : > { %795 = vadd.xlane.f32.xlu0 %v794_v46 }
 0x4b2   : > { %v790_v20 = vpop.xlane.xlu2 %789 }
 0x4b3   : > { %1717 = vrcp.f32 %v790_v20  ;;  %v856_v24 = vand.u32 2147483648, %v790_v20  ;;  %v854_v27 = vand.u32 2147483647, %v790_v20  ;;  %vm850_vm11 = vweird.f32 %v790_v20 }
 0x4b5   : > { %v857_v35 = vor.u32 1.1754944e-38, %v856_v24  ;;  %vm855_vm13 = vcmp.eq.f32.partialorder %v854_v27, 8.507059e+37  ;;  %v1187_v24 = vperm.slane %v1981_v26, 2 }
 0x4b9   : > { %v1718_v58 = vpop.eup %1717 }
 0x4ba   : > { %v846_v21 = vmul.f32 %v1718_v58, %v790_v20  ;;  %v802_v22 = vpop.xlane.xlu2 %801  ;;  %vm851_vm10 = vweird.f32 %v1718_v58 }
 0x4bb   : > { %1719 = vrcp.f32 %v802_v22  ;;  %vm852_vm12 = vmor %vm850_vm11, %vm851_vm10  ;;  %v912_v48 = vand.u32 2147483648, %v802_v22  ;;  %v910_v50 = vand.u32 2147483647, %v802_v22  ;;  %vm906_vm15 = vweird.f32 %v802_v22 }
 0x4bc   : > { %v847_v23 = vsub.f32 1.0, %v846_v21 }
 0x4bd   : > { %v913_v51 = vor.u32 1.1754944e-38, %v912_v48  ;;  %vm911_vm2 = vcmp.eq.f32.partialorder %v910_v50, 8.507059e+37 }
 0x4be   : > { %v848_v25 = vmul.f32 %v1718_v58, %v847_v23 }
 0x4c0   : > { %v849_v29 = vadd.f32 %v1718_v58, %v848_v25 }
 0x4c1   : > { %v1720_v30 = vpop.eup %1719  ;;  %v952_v54 = vpop.f32.mrf.mxu1 }
 0x4c2   : > { %v902_v36 = vmul.f32 %v1720_v30, %v802_v22  ;;  %v853_v37 = vsel %vm852_vm12, %v1718_v58, %v849_v29  ;;  %vm907_vm14 = vweird.f32 %v1720_v30 }
 0x4c3   : > { %v858_v38 = vsel %vm855_vm13, %v857_v35, %v853_v37  ;;  %vm908_vm1 = vmor %vm906_vm15, %vm907_vm14 }
 0x4c4   : > { %v903_v40 = vsub.f32 1.0, %v902_v36  ;;  %v918_v41 = vmul.f32 %v2136_v47, %v858_v38  ;;  %v1057_v47 = vpop.f32.mrf.mxu0 }
 0x4c6   : > { %v904_v49 = vmul.f32 %v1720_v30, %v903_v40  ;;  %1592 = vmatmul.msk.f32.gmra.mxu2 %vm730_vm6, %v918_v41 }
 0x4c7   : > { %v987_v19 = vpop.f32.mrf.mxu2 }
 0x4c8   : > { %v905_v43 = vadd.f32 %v1720_v30, %v904_v49 }
 0x4ca   : > { %v909_v42 = vsel %vm908_vm1, %v1720_v30, %v905_v43 }
 0x4cb   : > { %v914_v45 = vsel %vm911_vm2, %v913_v51, %v909_v42 }
 0x4cc   : > { %v922_v52 = vmul.f32 %v2148_v3, %v914_v45 }
 0x4ce   : > { %1596 = vmatmul.msk.f32.gmra.mxu0 %vm730_vm6, %v922_v52  ;;  %1599 = vmatmul.msk.f32.vlgmr.msrb.gmra.mxu2 %vm577_vm5, %v952_v54 }
 0x4cf   : > { %v1022_v16 = vpop.f32.mrf.mxu3 }
 0x4d6   : > { %1603 = vmatmul.msk.f32.vlgmr.msrb.gmra.mxu0 %vm577_vm5, %v1057_v47 }
 0x4e0   : > { %v784_v56 = vpop.xlane.xlu1 %783 }
 0x4e1   : > { %1721 = vrcp.f32 %v784_v56  ;;  %v828_v44 = vand.u32 2147483648, %v784_v56  ;;  %v826_v61 = vand.u32 2147483647, %v784_v56  ;;  %vm822_vm4 = vweird.f32 %v784_v56 }
 0x4e3   : > { %v829_v0 = vor.u32 1.1754944e-38, %v828_v44  ;;  %vm827_vm8 = vcmp.eq.f32.partialorder %v826_v61, 8.507059e+37 }
 0x4e7   : > { %v1722_v57 = vpop.eup %1721 }
 0x4e8   : > { %v818_v59 = vmul.f32 %v1722_v57, %v784_v56  ;;  %vm823_vm3 = vweird.f32 %v1722_v57 }
 0x4e9   : > { %vm824_vm7 = vmor %vm822_vm4, %vm823_vm3 }
 0x4ea   : > { %v819_v39 = vsub.f32 1.0, %v818_v59 }
 0x4ec   : > { %v820_v60 = vmul.f32 %v1722_v57, %v819_v39 }
 0x4ee   : > { %v821_v63 = vadd.f32 %v1722_v57, %v820_v60 }
 0x4f0   : > { %v825_v1 = vsel %vm824_vm7, %v1722_v57, %v821_v63 }
 0x4f1   : > { %v830_v2 = vsel %vm827_vm8, %v829_v0, %v825_v1  ;;  %v1239_v1 = vperm.slane %v1981_v26, 4 }
 0x4f2   : > { %v916_v3 = vmul.f32 %v2157_v11, %v830_v2 }
 0x4f4   : > { %1590 = vmatmul.msk.f32.gmra.mxu1 %vm730_vm6, %v916_v3 }
 0x4f9   : > { %v796_v13 = vpop.xlane.xlu0 %795 }
 0x4fa   : > { %1723 = vrcp.f32 %v796_v13  ;;  %v884_v6 = vand.u32 2147483648, %v796_v13  ;;  %v882_v9 = vand.u32 2147483647, %v796_v13  ;;  %vm878_vm10 = vweird.f32 %v796_v13 }
 0x4fc   : > { %1597 = vmatmul.msk.f32.vlgmr.msra.gmra.mxu1 %vm577_vm5, %v987_v19  ;;  %v885_v12 = vor.u32 1.1754944e-38, %v884_v6  ;;  %vm883_vm12 = vcmp.eq.f32.partialorder %v882_v9, 8.507059e+37 }
 0x500   : > { %v1724_v32 = vpop.eup %1723 }
 0x501   : > { %v874_v4 = vmul.f32 %v1724_v32, %v796_v13  ;;  %vm879_vm9 = vweird.f32 %v1724_v32 }
 0x502   : > { %vm880_vm11 = vmor %vm878_vm10, %vm879_vm9 }
 0x503   : > { %v875_v5 = vsub.f32 1.0, %v874_v4 }
 0x505   : > { %v876_v7 = vmul.f32 %v1724_v32, %v875_v5 }
 0x507   : > { %v877_v10 = vadd.f32 %v1724_v32, %v876_v7 }
 0x509   : > { %v881_v14 = vsel %vm880_vm11, %v1724_v32, %v877_v10 }
 0x50a   : > { %v886_v11 = vsel %vm883_vm12, %v885_v12, %v881_v14 }
 0x50b   : > { %v920_v15 = vmul.f32 %v2162_v17, %v886_v11 }
 0x50d   : > { %1594 = vmatmul.msk.f32.gmra.mxu3 %vm730_vm6, %v920_v15 }
 0x515   : > { %1601 = vmatmul.msk.f32.vlgmr.msrb.gmra.mxu3 %vm577_vm5, %v1022_v16 }
 0x549   : > { %v990_v46 = vpop.f32.mrf.mxu2 }
 0x54a   : > { %1598 = vmatmul.msk.f32.gmra.mxu1 %vm577_vm5, %v990_v46 }
 0x54b   : > { %v1060_v53 = vpop.f32.mrf.mxu0 }
 0x54c   : > { %1604 = vmatmul.msk.f32.gmra.mxu0 %vm577_vm5, %v1060_v53 }
 0x551   : > { %v1119_v21 = vpop.f32.mrf.mxu2 }
 0x553   : > { %v1179_v25 = vpop.f32.mrf.mxu0 }
 0x571   : > { %v955_v18 = vpop.f32.mrf.mxu1 }
 0x572   : > { %1600 = vmatmul.msk.f32.gmra.mxu2 %vm577_vm5, %v955_v18 }
 0x579   : > { %v1090_v58 = vpop.f32.mrf.mxu1 }
 0x57a   : > { %v1120_v17 = vadd.f32 %v1119_v21, %v1090_v58 }
 0x590   : > { %v1025_v20 = vpop.f32.mrf.mxu3 }
 0x591   : > { %1602 = vmatmul.msk.f32.gmra.mxu3 %vm577_vm5, %v1025_v20 }
 0x598   : > { %v1148_v22 = vpop.f32.mrf.mxu3 }
 0x599   : > { %v1154_v23 = vadd.f32 %v1148_v22, %v1120_v17 }
 0x59b   : > { %v1185_v27 = vadd.f32 %v1179_v25, %v1154_v23  ;;  %v1270_v25 = vld [vmem:[%s2381_s7 + $0x18] sm:$0xff] }
 0x59c   : > { %1293 = vmatpush.msrb.mxu1 %v1270_v25 }
 0x59d   : > { %v1188_v29 = vadd.f32 %v1187_v24, %v1185_v27  ;;  %v1269_v27 = vld [vmem:[%s2381_s7 + $0x10] sm:$0xff] }
 0x59e   : > { %1294 = vmatpush.msrb.mxu1 %v1269_v27 }
 0x59f   : > { %v1190_v30 = vadd.f32 %v1188_v29, %v1989_v33  ;;  %v1268_v29 = vld [vmem:[%s2381_s7 + $0x8] sm:$0xff] }
 0x5a0   : > { %1295 = vmatpush.msrb.mxu1 %v1268_v29 }
 0x5a1   : > { %v1192_v35 = vsel %vm469_vm0, %v1190_v30, 0.0 }
 0x5a2   : > { %1193 = vadd.xlane.f32.xlu0 %v1192_v35 }
 0x5c7   : > { %v1093_v37 = vpop.f32.mrf.mxu1 }
 0x5c9   : > { %v1182_v49 = vpop.f32.mrf.mxu0 }
 0x5f5   : > { %v1122_v36 = vpop.f32.mrf.mxu2 }
 0x5f6   : > { %v1123_v38 = vadd.f32 %v1122_v36, %v1093_v37 }
 0x614   : > { %v1151_v40 = vpop.f32.mrf.mxu3 }
 0x615   : > { %v1155_v41 = vadd.f32 %v1151_v40, %v1123_v38  ;;  %v1194_v48 = vpop.xlane.xlu0 %1193  ;;  %v1321_v38 = vld [vmem:[%s2383_s9 + $0x78] sm:$0xff]  ;;  %v1320_v40 = vld [vmem:[%s2383_s9 + $0x70] sm:$0xff] }
 0x616   : > { %v1198_v50 = vmul.f32 %v1194_v48, %v1961_v8  ;;  %1322 = vmatpush.msra.mxu2 %v1321_v38  ;;  %v1318_v48 = vld [vmem:[%s2383_s9 + $0x60] sm:$0xff] }
 0x617   : > { %v1186_v43 = vadd.f32 %v1182_v49, %v1155_v41  ;;  %v1319_v41 = vld [vmem:[%s2383_s9 + $0x68] sm:$0xff] }
 0x618   : > { %v1200_v51 = vsub.f32 %v1190_v30, %v1198_v50  ;;  %v1267_v30 = vld [vmem:[%s2381_s7] sm:$0xff]  ;;  %1323 = vmatpush.msra.mxu2 %v1320_v40  ;;  %v1317_v50 = vld [vmem:[%s2383_s9 + $0x58] sm:$0xff] }
 0x619   : > { %v1189_v42 = vadd.f32 %v1187_v24, %v1186_v43  ;;  %1296 = vmatpush.msrb.mxu1 %v1267_v30 }
 0x61a   : > { %v1202_v45 = vmul.f32 %v1200_v51, %v1200_v51  ;;  %1324 = vmatpush.msra.mxu2 %v1319_v41 }
 0x61b   : > { %v1191_v52 = vadd.f32 %v1189_v42, %v1998_v34  ;;  %v1236_v34 = vperm.slane %v1981_v26, 3 }
 0x61c   : > { %v1204_v54 = vsel %vm469_vm0, %v1202_v45, 0.0  ;;  %1325 = vmatpush.msra.mxu2 %v1318_v48  ;;  %v1315_v45 = vld [vmem:[%s2383_s9 + $0x48] sm:$0xff] }
 0x61d   : > { %1205 = vadd.xlane.f32.xlu1 %v1204_v54  ;;  %v1195_v47 = vsel %vm469_vm0, %v1191_v52, 0.0  ;;  %v1314_v54 = vld [vmem:[%s2383_s9 + $0x40] sm:$0xff] }
 0x61e   : > { %1196 = vadd.xlane.f32.xlu0 %v1195_v47  ;;  %1326 = vmatpush.msra.mxu2 %v1317_v50 }
 0x690   : > { %v1206_v55 = vpop.xlane.xlu1 %1205 }
 0x691   : > { %v1210_v56 = vmul.f32 %v1206_v55, %v1961_v8  ;;  %v1197_v2 = vpop.xlane.xlu0 %1196  ;;  %v1313_v55 = vld [vmem:[%s2383_s9 + $0x38] sm:$0xff] }
 0x692   : > { %v1199_v13 = vmul.f32 %v1197_v2, %v1961_v8 }
 0x693   : > { %v1212_v57 = vadd.f32 1e-05, %v1210_v56 }
 0x694   : > { %v1201_v4 = vsub.f32 %v1191_v52, %v1199_v13 }
 0x695   : > { %1725 = vrsqrt.f32 %v1212_v57  ;;  %vm1220_vm6 = vweird.f32 %v1212_v57 }
 0x696   : > { %v1203_v6 = vmul.f32 %v1201_v4, %v1201_v4 }
 0x698   : > { %v1207_v7 = vsel %vm469_vm0, %v1203_v6, 0.0 }
 0x69b   : > { %v1726_v59 = vpop.eup %1725 }
 0x69c   : > { %v1215_v39 = vmul.f32 %v1726_v59, %v1212_v57  ;;  %vm1221_vm5 = vweird.f32 %v1726_v59  ;;  %v1312_v57 = vld [vmem:[%s2383_s9 + $0x30] sm:$0xff] }
 0x69d   : > { %vm1222_vm13 = vmor %vm1220_vm6, %vm1221_vm5 }
 0x69e   : > { %v1216_v44 = vmul.f32 %v1726_v59, %v1215_v39 }
 0x6a0   : > { %v1217_v60 = vmul.f32 0.5, %v1216_v44  ;;  %v1311_v44 = vld [vmem:[%s2383_s9 + $0x28] sm:$0xff] }
 0x6a2   : > { %v1218_v61 = vsub.f32 1.5, %v1217_v60 }
 0x6a4   : > { %v1219_v62 = vmul.f32 %v1726_v59, %v1218_v61  ;;  %v1310_v61 = vld [vmem:[%s2383_s9 + $0x20] sm:$0xff] }
 0x6a6   : > { %v1223_v63 = vsel %vm1222_vm13, %v1726_v59, %v1219_v62 }
 0x6a7   : > { %v1234_v0 = vmul.f32 %v1223_v63, %v1200_v51  ;;  %v1316_v51 = vld [vmem:[%s2383_s9 + $0x50] sm:$0xff]  ;;  %v1306_v63 = vld [vmem:[%s2383_s9] sm:$0xff] }
 0x6a8   : > { %1327 = vmatpush.msra.mxu2 %v1316_v51 }
 0x6a9   : > { %v1237_v3 = vmul.f32 %v1236_v34, %v1234_v0  ;;  %v1348_v0 = vperm.slane %v1981_v26, 5  ;;  %v1688_v26 = vld [vmem:[%s2384_s10 + $0x8] ss:$0 sm:$0xff] }
 0x6aa   : > { %1328 = vmatpush.msra.mxu2 %v1315_v45 }
 0x6ab   : > { %v1240_v19 = vadd.f32 %v1239_v1, %v1237_v3  ;;  %1350 = vrot.lane.b32.xlu0 %v1348_v0, %s2411_s20 }
 0x6ac   : > { %1329 = vmatpush.msra.mxu2 %v1314_v54 }
 0x6ad   : > { %v2206_v32 = vadd.f32 %v1240_v19, %v1989_v33 }
 0x6ae   : > { %1330 = vmatpush.msra.mxu2 %v1313_v55 }
 0x6af   : > { %v1243_v5 = vsel %vm469_vm0, %v2206_v32, 0.0 }
 0x6b0   : > { %1244 = vadd.xlane.f32.xlu2 %v1243_v5  ;;  %1331 = vmatpush.msra.mxu2 %v1312_v57 }
 0x6b2   : > { %1332 = vmatpush.msra.mxu2 %v1311_v44 }
 0x6b4   : > { %1333 = vmatpush.msra.mxu2 %v1310_v61 }
 0x6b8   : > { %1208 = vadd.xlane.f32.xlu2 %v1207_v7 }
 0x723   : > { %v1245_v9 = vpop.xlane.xlu2 %1244 }
 0x724   : > { %v1246_v10 = vmul.f32 %v1245_v9, %v1961_v8 }
 0x726   : > { %v2213_v12 = vsub.f32 %v2206_v32, %v1246_v10  ;;  %v1351_v10 = vpop.permute.xlu0 %1350 }
 0x728   : > { %v1248_v14 = vmul.f32 %v2213_v12, %v2213_v12 }
 0x72a   : > { %v1249_v33 = vsel %vm469_vm0, %v1248_v14, 0.0 }
 0x72b   : > { %1250 = vadd.xlane.f32.xlu1 %v1249_v33  ;;  %v1209_v11 = vpop.xlane.xlu2 %1208 }
 0x72c   : > { %v1211_v15 = vmul.f32 %v1209_v11, %v1961_v8 }
 0x72e   : > { %v1213_v16 = vadd.f32 1e-05, %v1211_v15 }
 0x730   : > { %1727 = vrsqrt.f32 %v1213_v16  ;;  %vm1230_vm15 = vweird.f32 %v1213_v16 }
 0x736   : > { %v1728_v46 = vpop.eup %1727 }
 0x737   : > { %v1225_v53 = vmul.f32 %v1728_v46, %v1213_v16  ;;  %vm1231_vm14 = vweird.f32 %v1728_v46 }
 0x738   : > { %vm1232_vm1 = vmor %vm1230_vm15, %vm1231_vm14 }
 0x739   : > { %v1226_v18 = vmul.f32 %v1728_v46, %v1225_v53 }
 0x73b   : > { %v1227_v20 = vmul.f32 0.5, %v1226_v18 }
 0x73d   : > { %v1228_v58 = vsub.f32 1.5, %v1227_v20  ;;  %v1733_v20 = vld [vmem:[%s2384_s10] sm:$0xff] }
 0x73f   : > { %v1229_v21 = vmul.f32 %v1728_v46, %v1228_v58  ;;  %v1388_v58 = vperm.slane %v1733_v20, 6 }
 0x741   : > { %v1233_v17 = vsel %vm1232_vm1, %v1728_v46, %v1229_v21  ;;  %v1394_v21 = vperm.slane %v1733_v20, 7 }
 0x742   : > { %v1235_v22 = vmul.f32 %v1233_v17, %v1201_v4 }
 0x744   : > { %v1238_v23 = vmul.f32 %v1236_v34, %v1235_v22  ;;  %v1309_v34 = vld [vmem:[%s2383_s9 + $0x18] sm:$0xff] }
 0x745   : > { %1334 = vmatpush.msra.mxu2 %v1309_v34 }
 0x746   : > { %v1241_v24 = vadd.f32 %v1239_v1, %v1238_v23  ;;  %v1687_v1 = vld [vmem:[%s2382_s8] ss:$0 sm:$0xff] }
 0x748   : > { %1354 = vrot.lane.b32.xlu1 %v1241_v24, %s2390_s15 }
 0x79e   : > { %v1251_v35 = vpop.xlane.xlu1 %1250 }
 0x79f   : > { %v1252_v36 = vmul.f32 %v1251_v35, %v1961_v8 }
 0x7a1   : > { %v1253_v37 = vadd.f32 1e-05, %v1252_v36 }
 0x7a3   : > { %1729 = vrsqrt.f32 %v1253_v37  ;;  %vm1260_vm3 = vweird.f32 %v1253_v37 }
 0x7a9   : > { %v1730_v49 = vpop.eup %1729 }
 0x7aa   : > { %v1255_v43 = vmul.f32 %v1730_v49, %v1253_v37  ;;  %vm1261_vm2 = vweird.f32 %v1730_v49 }
 0x7ab   : > { %vm1262_vm4 = vmor %vm1260_vm3, %vm1261_vm2 }
 0x7ac   : > { %v1256_v42 = vmul.f32 %v1730_v49, %v1255_v43 }
 0x7ae   : > { %v1257_v52 = vmul.f32 0.5, %v1256_v42 }
 0x7b0   : > { %v1258_v47 = vsub.f32 1.5, %v1257_v52 }
 0x7b2   : > { %v1259_v56 = vmul.f32 %v1730_v49, %v1258_v47 }
 0x7b4   : > { %v1263_v59 = vsel %vm1262_vm4, %v1730_v49, %v1259_v56 }
 0x7b5   : > { %v1264_v39 = vmul.f32 %v1263_v59, %v2213_v12 }
 0x7b7   : > { %v1265_v60 = vmul.f32 %v1264_v39, %v499_v28  ;;  %v1308_v28 = vld [vmem:[%s2383_s9 + $0x10] sm:$0xff] }
 0x7b8   : > { %1335 = vmatpush.msra.mxu2 %v1308_v28 }
 0x7b9   : > { %v1266_v62 = vadd.f32 %v1265_v60, %v501_v31  ;;  %v1307_v31 = vld [vmem:[%s2383_s9 + $0x8] sm:$0xff] }
 0x7ba   : > { %1336 = vmatpush.msra.mxu2 %v1307_v31  ;;  %v1355_v33 = vpop.permute.xlu1 %1354 }
 0x7bb   : > { %1605 = vmatmul.msk.f32.vlgmr.msrb.gmra.mxu1 %vm469_vm0, %v1266_v62 }
 0x7bc   : > { %1337 = vmatpush.msra.mxu2 %v1306_v63 }
 0x7c3   : > { %1606 = vmatmul.msk.f32.gmra.mxu1 %vm469_vm0, %v1241_v24 }
 0x838   : > { %v1298_v2 = vpop.f32.mrf.mxu1 }
 0x839   : > { %v1299_v3 = vadd.f32 %v1687_v1, %v1298_v2 }
 0x83b   : > { %v1304_v13 = vmax.f32 %v1299_v3, 0.0 }
 0x83d   : > { %1338 = vmatmul.f32.vlgmr.msra.gmra.mxu2 %v1304_v13 }
 0x840   : > { %v1301_v19 = vpop.f32.mrf.mxu1 }
 0x841   : > { %v1302_v4 = vadd.f32 %v1687_v1, %v1301_v19 }
 0x843   : > { %v1305_v5 = vmax.f32 %v1302_v4, 0.0 }
 0x845   : > { %1341 = vmatmul.f32.gmra.mxu2 %v1305_v5 }
 0x8c0   : > { %v1339_v6 = vpop.f32.mrf.mxu2 }
 0x8c1   : > { %v1345_v7 = vadd.f32 %v1339_v6, %v2206_v32 }
 0x8c3   : > { %v1347_v9 = vadd.f32 %v1688_v26, %v1345_v7 }
 0x8c5   : > { %1400 = vst.msk [vmem:[%s2303_s17] sm:$0xff] %vm469_vm0, %v1347_v9 }
 0x8c8   : > { %v1342_v12 = vpop.f32.mrf.mxu2 }
 0x8c9   : > { %v1353_v14 = vadd.f32 %v1351_v10, %v1342_v12 }
 0x8cb   : > { %v1357_v11 = vadd.f32 %v1355_v33, %v1353_v14 }
 0x8cd   : > { %1359 = vrot.lane.b32.xlu2 %v1357_v11, %s2412_s18 }
 0x927   : > { %v1360_v15 = vpop.permute.xlu2 %1359 }
 0x928   : > { %v1362_v16 = vsel %vm469_vm0, %v1360_v15, 0.0 }
 0x929   : > { %1363 = vadd.xlane.f32.xlu0 %v1362_v16 }
 0x99c   : > { %v1364_v46 = vpop.xlane.xlu0 %1363 }
 0x99d   : > { %v1365_v32 = vmul.f32 %v1364_v46, %v1961_v8 }
 0x99f   : > { %v1366_v53 = vsub.f32 %v1357_v11, %v1365_v32 }
 0x9a1   : > { %v1367_v18 = vmul.f32 %v1366_v53, %v1366_v53 }
 0x9a3   : > { %1369 = vrot.lane.b32.xlu1 %v1367_v18, %s2412_s18 }
 0x9ab   : > { %1390 = vrot.lane.b32.xlu1 %v1388_v58, %s2411_s20 }
 0x9b3   : > { %1396 = vrot.lane.b32.xlu1 %v1394_v21, %s2411_s20  ;;  %s1422_s20 = scalar_lea.hbm %s2385_s11, %s2393_s16 }
 0x9b4   : > { %s1426_s26 = sshll.u32 %s1422_s20, 4  ;;  %s1427_s26 = int_to_ptr.hbm [resolvable:$true] %s1426_s26 }
 0x9b5   : > { %s1748_s1 = sshra.s32 %s1427_s26, 4  ;;  %s1749_s1 = int_to_ptr.hbm [resolvable:$true] %s1748_s1 }
 0x9b6   : > { %s1750_s2 = scalar_lea.hbm %s1749_s1, 8  ;;  %p1755_p0 = scmp.lt.s32.totalorder %s1749_s1, %s2385_s11 }
 0x9b7   : > { %p1751_p11 = scmp.ne.s32.totalorder %s1749_s1, %s1750_s2  ;;  %p1756_p1 = scmp.lt.s32.totalorder %s1754_s0, %s1750_s2 }
 0x9b9   : > { %p1752_p12 = pnand %p1751_p11, %p1940_p5  ;;  %p1757_p2 = por %p1756_p1, %p1755_p0 }
 0x9bb   : > { %p1753_p13 = pneg %p1752_p12 }
 0x9bd   : > { %p1758_p3 = pnand %p1757_p2, %p1753_p13 }
 0xa15   : > { %v1370_v17 = vpop.permute.xlu1 %1369 }
 0xa16   : > { %v1372_v22 = vsel %vm469_vm0, %v1370_v17, 0.0 }
 0xa17   : > { %1373 = vadd.xlane.f32.xlu2 %v1372_v22 }
 0xa1d   : > { %v1391_v35 = vpop.permute.xlu1 %1390 }
 0xa8a   : > { %v1374_v23 = vpop.xlane.xlu2 %1373 }
 0xa8b   : > { %v1375_v24 = vmul.f32 %v1374_v23, %v1961_v8 }
 0xa8d   : > { %v1376_v25 = vadd.f32 1e-05, %v1375_v24 }
 0xa8f   : > { %1731 = vrsqrt.f32 %v1376_v25 }
 0xa95   : > { %v1732_v27 = vpop.eup %1731 }
 0xa96   : > { %v1378_v29 = vmul.f32 %v1732_v27, %v1376_v25  ;;  %vm1384_vm7 = vweird.f32 %v1732_v27 }
 0xa98   : > { %v1379_v30 = vmul.f32 %v1732_v27, %v1378_v29 }
 0xa9a   : > { %v1380_v36 = vmul.f32 0.5, %v1379_v30 }
 0xa9c   : > { %v1381_v37 = vsub.f32 1.5, %v1380_v36 }
 0xa9d   : > { %1761 = shalt.err (!%p1758_p3)
}
 0xa9e   : > { %1613 = dma.vmem_to_hbm [thread:$0]  (%p1940_p5), %s1425_s19, 128, %s1427_s26, %s1407_s28   ;;  %vm1383_vm8 = vweird.f32 %v1376_v25  ;;  %v1382_v8 = vmul.f32 %v1732_v27, %v1381_v37  ;;  %v1397_v41 = vpop.permute.xlu1 %1396 }
 0xa9f   : > { %vm1385_vm9 = vmor %vm1383_vm8, %vm1384_vm7  ;;  %s2413_s1 = sshll.u32 %s1923_s25, 3  ;;  %s2414_s17 = sshll.u32 %s2294_s29, 3 }
 0xaa0   : > { %v1386_v38 = vsel %vm1385_vm9, %v1732_v27, %v1382_v8  ;;  %s1436_s4 = scalar_lea.hbm %s2386_s12, %s2413_s1  ;;  %s450_s28 = scalar_lea.vmem [#allocation4], %s2414_s17 }
 0xaa1   : > { %v1387_v40 = vmul.f32 %v1386_v38, %v1366_v53  ;;  %s1438_s16 = sshll.u32 %s450_s28, 4  ;;  %s1440_s20 = sshll.u32 %s1436_s4, 4  ;;  %s1439_s16 = int_to_ptr.vmem [resolvable:$true] %s1438_s16  ;;  %s1441_s20 = int_to_ptr.hbm [resolvable:$true] %s1440_s20 }
 0xaa2   : > { %s1412_s19 = scalar_lea.sflag [#allocation5], %s2294_s29  ;;  %s1776_s26 = sshra.s32 %s1441_s20, 4  ;;  %s1777_s26 = int_to_ptr.hbm [resolvable:$true] %s1776_s26 }
 0xaa3   : > { %v1393_v48 = vmul.f32 %v1391_v35, %v1387_v40  ;;  %s1778_s0 = scalar_lea.hbm %s1777_s26, 8  ;;  %s1782_s15 = scalar_lea.hbm %s2386_s12, 16 }
 0xaa4   : > { %p1779_p4 = scmp.ne.s32.totalorder %s1777_s26, %s1778_s0  ;;  %p1783_p9 = scmp.lt.s32.totalorder %s1777_s26, %s2386_s12 }
 0xaa5   : > { %v1399_v49 = vadd.f32 %v1397_v41, %v1393_v48  ;;  %p1784_p10 = scmp.lt.s32.totalorder %s1782_s15, %s1778_s0 }
 0xaa6   : > { %p1780_p7 = pnand %p1779_p4, %p1940_p5 }
 0xaa7   : > { %1402 = vrot.lane.b32.xlu1 %v1399_v49, %s2412_s18  ;;  %p1785_p11 = por %p1784_p10, %p1783_p9 }
 0xaa8   : > { %p1781_p8 = pneg %p1780_p7 }
 0xaaa   : > { %p1786_p12 = pnand %p1785_p11, %p1781_p8 }
 0xb19   : > { %v1403_v50 = vpop.permute.xlu1 %1402 }
 0xb1a   : > { %1405 = vst.msk [vmem:[%s450_s28] sm:$0xff] %vm469_vm0, %v1403_v50 }
 0xb1b   : > { %1789 = shalt.err (!%p1786_p12)
}
 0xb1c   : > { %1614 = dma.vmem_to_hbm [thread:$0]  (%p1940_p5), %s1439_s16, 128, %s1441_s20, %s1412_s19  }
 0xb1d PF: > { %p1624_p13 = scmp.ge.s32.totalorder %s1828_s24, 2  ;;  %s1452_s29 = sand.u32 1, %s1816_s21  }
 0xb1e   : > { %s1453_s3 = scalar_lea.sflag [#allocation3], %s1452_s29 }
 0xb1f   : > { %p1618_p0 = pnand %p1624_p13, %p1944_p6 }
 0xb21   : > { %p1619_p1 = pneg %p1618_p0 }
 0xb23   : > { %1807 = dma.done.wait (%p1619_p1), %s1453_s3, 128  }
 0xb24   : > { %1809 = vsyncadd (%p1619_p1), %s1453_s3, 4294967168  ;;  %s1463_s4 = scalar_lea.sflag [#allocation5], %s1452_s29 }
 0xb25   : > { %1811 = dma.done.wait (%p1619_p1), %s1463_s4, 128  }
 0xb26   : > { %1813 = vsyncadd (%p1619_p1), %s1463_s4, 4294967168  ;;  %p26_p5 = scmp.ge.s32.totalorder %s1927_s27, 4   ;;  %s2415_s21 = smov %s1820_s22 }
 0xb27   : > { %s2416_s22 = smov %s1824_s23  ;;  %s2417_s23 = smov %s1938_s30 }
 0xb28   : > { %s2418_s24 = smov %s1927_s27  ;;  %28 = sbr.rel (!%p26_p5) target bundleno = 11 (0xb), region = 125 }
 0xb2d   :  { %1469 = vsyncpa [#allocation3], 1 }
 0xb2e   :  { %1471 = vsyncpa [#allocation3 + $0x1], 1 }
 0xb2f   :  { %1472 = vsyncpa [#allocation5], 1 }
 0xb30   :  { %1474 = vsyncpa [#allocation5 + $0x1], 1 }

</bundles_post_ra>
